<compile_context>
chip_gen: v7x
topology: tpu7x:2x2x1
jax: 0.10.0
libtpu: 0.0.40
codegen_flags: <defaults>
</compile_context>

<pallas_src>
import functools
import math

import jax
import jax.numpy as jnp
from jax import lax
from jax.experimental import pallas as pl
from jax.experimental.pallas import tpu as pltpu


# ----------------------------------------------------------------------------
# Helpers used inside the kernel (trace-time Python, value-level ops)
# ----------------------------------------------------------------------------
def _lane_block_allreduce(v, nblk, blk):
    """Sum a (1, nblk*blk) row over its `nblk` lane blocks of width `blk`;
    the result is replicated into every block (no broadcast-back needed)."""
    if nblk == 1:
        return v
    width = nblk * blk
    if (nblk & (nblk - 1)) == 0:          # power of two: circular shift-add tree
        k = 1
        while k < nblk:
            s = k * blk
            if width % 128 == 0:
                shifted = pltpu.roll(v, shift=s, axis=1)       # XLU rotate
            else:                           # sub-128-lane value: slice rotate
                shifted = jnp.concatenate([v[:, s:], v[:, :s]], axis=1)
            v = v + shifted
            k *= 2
        return v
    # generic fallback: fold then tile
    tot = v[:, 0:blk]
    for w in range(1, nblk):
        tot = tot + v[:, w * blk:(w + 1) * blk]
    return jnp.concatenate([tot] * nblk, axis=1)


# ----------------------------------------------------------------------------
# Fused Pallas kernel: the whole ConvNet forward
# ----------------------------------------------------------------------------
def fused_convnet_kernel(*refs, layer_dims):
    depth = len(layer_dims)
    x_ref = refs[0]
    wb_refs = refs[1:1 + depth]            # per-layer (3*W*Cin, W*Cout) bf16 banded weights
    gamma_ref = refs[1 + depth]            # (depth, maxWC)  gamma pre-tiled to lane layout
    beta_ref = refs[2 + depth]             # (depth, maxWC)  beta  pre-tiled to lane layout
    out_ref = refs[3 + depth]              # (N, Hf, Wf*Cout)
    pad_scr = refs[4 + depth]              # (N, maxH+2, max W*Cin)  halo staging buffer
    row_scr = refs[5 + depth]              # (N, maxH,   max W/2*Cout) pooling buffer

    N = x_ref.shape[0]

    def stage(result, Hn, WCn):
        """Write a (N, Hn, WCn) activation into the halo buffer exactly once
        (rows [1, Hn+1)), zeroing the two halo rows over the same lanes."""
        zrow = jnp.zeros((N, 1, WCn), jnp.float32)
        pad_scr[:, pl.ds(0, 1), pl.ds(0, WCn)] = zrow
        pad_scr[:, pl.ds(Hn + 1, 1), pl.ds(0, WCn)] = zrow
        pad_scr[:, pl.ds(1, Hn), pl.ds(0, WCn)] = result

    # Stage the network input (collapsed NHWC: (N, H0, W0*Cin0)).
    H0, W0, Cin0, _, _ = layer_dims[0]
    stage(x_ref[...], H0, W0 * Cin0)

    for i in range(depth):
        H, W, Cin, Cout, pool = layer_dims[i]
        WCin, WC, M = W * Cin, W * Cout, N * H

        # --- conv3x3(pad=1): ONE (M, 3*WCin) @ (3*WCin, WC) MXU matmul -------
        # Row-im2col: concat the 3 vertical bands along lanes (K-concat).
        bands = [pad_scr[:, pl.ds(kh, H), pl.ds(0, WCin)] for kh in range(3)]
        lhs = jnp.concatenate(bands, axis=2).reshape(M, 3 * WCin)
        acc = jnp.dot(lhs.astype(jnp.bfloat16), wb_refs[i][...],
                      preferred_element_type=jnp.float32)      # f32 accumulate
        # conv bias is skipped: under training-mode BN it is exactly cancelled
        # by the mean subtraction ((x+b) - mean(x+b) == x - mean(x)).

        # --- BatchNorm2d, training-mode batch stats, single pass -------------
        # TODO(synk): single-pass E[x^2]-E[x]^2 can cancel badly for trained
        #             weights with large per-channel means; fine at this scale.
        s1 = _lane_block_allreduce(jnp.sum(acc, axis=0, keepdims=True), W, Cout)
        s2 = _lane_block_allreduce(jnp.sum(acc * acc, axis=0, keepdims=True), W, Cout)
        inv_n = 1.0 / float(N * H * W)
        mean = s1 * inv_n                                   # (1, WC), replicated per block
        var = s2 * inv_n - mean * mean
        gamma = gamma_ref[pl.ds(i, 1), pl.ds(0, WC)]        # pre-tiled (1, WC)
        beta = beta_ref[pl.ds(i, 1), pl.ds(0, WC)]
        scale = gamma * lax.rsqrt(var + 1e-5)
        shift = beta - mean * scale

        # --- BN affine + ReLU (VPU, f32, lane-dense) --------------------------
        y = jnp.maximum(acc * scale + shift, 0.0)           # (M, WC)

        if pool:
            H2, W2 = H // 2, W // 2
            # Horizontal 2:1 max: one shifted-slice max over full lane width,
            # then keep the even Cout-blocks.
            pairmax = jnp.maximum(y[:, 0:WC - Cout], y[:, Cout:WC])
            hsel = [pairmax[:, (2 * w) * Cout:(2 * w + 1) * Cout] for w in range(W2)]
            yh = jnp.concatenate(hsel, axis=1) if W2 > 1 else hsel[0]
            # Vertical 2:1 max: one store + two strided-row reads of row_scr.
            row_scr[:, pl.ds(0, H), pl.ds(0, W2 * Cout)] = yh.reshape(N, H, W2 * Cout)
            ev = row_scr[:, pl.ds(0, H2, 2), pl.ds(0, W2 * Cout)]
            od = row_scr[:, pl.ds(1, H2, 2), pl.ds(0, W2 * Cout)]
            result, Hn, WCn = jnp.maximum(ev, od), H2, W2 * Cout
        else:
            result, Hn, WCn = y.reshape(N, H, WC), H, WC

        if i + 1 < depth:
            stage(result, Hn, WCn)      # next layer's halo buffer, written once
        else:
            out_ref[...] = result


# ----------------------------------------------------------------------------
# One-time parameter preparation (hoisted out of the forward pass)
# ----------------------------------------------------------------------------
def prepare_params(params, in_ch, in_h, in_w):
    """Per-layer fused block-banded conv matrices (bf16) + lane-tiled BN params.

    Fused banded matrix rows are ordered [kh=0 | kh=1 | kh=2] blocks of W*Cin:
      B[kh*W*Cin + w*Cin + ci, x*Cout + co] = weight[co, ci, kh, w - x + 1]
      for w in {x-1, x, x+1} (clipped at borders -> implicit zero pad in W).
    """
    H, W, Cin = in_h, in_w, in_ch
    banded, gtiles, btiles, layer_dims = [], [], [], []
    for i, (w_oihw, _b, gamma, beta) in enumerate(params):
        Cout = w_oihw.shape[0]
        pool = i < 4
        w_hwio = jnp.transpose(w_oihw, (2, 3, 1, 0)).astype(jnp.float32)  # (3,3,Cin,Cout)
        per_kh = []
        for kh in range(3):
            blk = w_hwio[kh].reshape(3 * Cin, Cout)        # rows ordered (kw, ci)
            cols = []
            for x in range(W):
                col = jnp.zeros((W * Cin, Cout), jnp.float32)
                lo, hi = max(0, x - 1), min(W, x + 2)      # contributing input cols
                kw_lo = lo - (x - 1)
                sub = blk[kw_lo * Cin:(kw_lo + (hi - lo)) * Cin, :]
                col = col.at[lo * Cin:hi * Cin, :].set(sub)
                cols.append(col)
            per_kh.append(jnp.concatenate(cols, axis=1))   # (W*Cin, W*Cout)
        banded.append(jnp.concatenate(per_kh, axis=0).astype(jnp.bfloat16))  # (3*W*Cin, W*Cout)
        gtiles.append(jnp.tile(gamma.astype(jnp.float32)[None, :], (1, W)))  # (1, W*Cout)
        btiles.append(jnp.tile(beta.astype(jnp.float32)[None, :], (1, W)))
        layer_dims.append((H, W, Cin, Cout, pool))
        # conv bias is intentionally unused (cancelled exactly by batch-stat BN)
        if pool:
            assert H % 2 == 0 and W % 2 == 0, "MaxPool2d(2) needs even spatial dims"
            H, W = H // 2, W // 2
        Cin = Cout
    max_wc = max(g.shape[1] for g in gtiles)
    gamma_t = jnp.concatenate(
        [jnp.pad(g, ((0, 0), (0, max_wc - g.shape[1]))) for g in gtiles], axis=0)
    beta_t = jnp.concatenate(
        [jnp.pad(b, ((0, 0), (0, max_wc - b.shape[1]))) for b in btiles], axis=0)
    return dict(banded=banded, gamma=gamma_t, beta=beta_t,
                layer_dims=tuple(layer_dims),
                out_hw=(H, W, Cin))        # feature-map dims after the last layer


# ----------------------------------------------------------------------------
# Full ConvNet forward (Pallas) — input is NCHW like the PyTorch module.
# ----------------------------------------------------------------------------
def convnet_forward(x_nchw, prep):
    N, Cin0, H0, W0 = x_nchw.shape
    layer_dims = prep["layer_dims"]
    Hf, Wf, Cf = prep["out_hw"]

    # NCHW -> collapsed NHWC (N, H, W*C): channels + width share the lane axis.
    x_coll = jnp.transpose(x_nchw, (0, 2, 3, 1)).reshape(N, H0, W0 * Cin0).astype(jnp.float32)

    max_pad_rows = max(d[0] for d in layer_dims) + 2
    max_pad_lanes = max(d[1] * d[2] for d in layer_dims)
    pool_layers = [d for d in layer_dims if d[4]]
    max_row_rows = max((d[0] for d in pool_layers), default=8)
    max_row_lanes = max(((d[1] // 2) * d[3] for d in pool_layers), default=128)

    inputs = [x_coll] + list(prep["banded"]) + [prep["gamma"], prep["beta"]]

    def full_spec(arr):
        nd = arr.ndim
        return pl.BlockSpec(arr.shape, lambda i, nd=nd: (0,) * nd)

    out_sds = jax.ShapeDtypeStruct((N, Hf, Wf * Cf), jnp.float32)
    kern = functools.partial(fused_convnet_kernel, layer_dims=layer_dims)

    # grid=(1,): everything is VMEM-resident for the whole network; only the
    # final feature map goes back to HBM.  (Pipeline double-buffering at
    # grid=(1,) is negligible at these sizes; see scaling TODOs above.)
    out = pl.pallas_call(
        kern,
        out_shape=out_sds,
        grid=(1,),
        in_specs=[full_spec(a) for a in inputs],
        out_specs=pl.BlockSpec(out_sds.shape, lambda i: (0, 0, 0)),
        scratch_shapes=[
            pltpu.VMEM((N, max_pad_rows, max_pad_lanes), jnp.float32),
            pltpu.VMEM((N, max_row_rows, max_row_lanes), jnp.float32),
        ],
        compiler_params=pltpu.CompilerParams(
            dimension_semantics=("arbitrary",),
            vmem_limit_bytes=32 * 1024 * 1024),
    )(*inputs)

    # Flatten exactly like torch.nn.Flatten applied to the NCHW feature map.
    out_nchw = jnp.transpose(out.reshape(N, Hf, Wf, Cf), (0, 3, 1, 2))
    return out_nchw.reshape(N, -1)


# ----------------------------------------------------------------------------
# Deterministic parameter init (synthetic; shapes from the nn.Module __init__)
# ----------------------------------------------------------------------------
def init_params(key, depth, outdim):
    params = []
    for i in range(depth):
        cin = 3 if i == 0 else outdim
        key, k1, k2, k3, k4 = jax.random.split(key, 5)
        fan_in = cin * 9
        w = jax.random.normal(k1, (outdim, cin, 3, 3), jnp.float32) * math.sqrt(2.0 / fan_in)
        b = 0.05 * jax.random.normal(k2, (outdim,), jnp.float32)
        gamma = 1.0 + 0.1 * jax.random.normal(k3, (outdim,), jnp.float32)
        beta = 0.1 * jax.random.normal(k4, (outdim,), jnp.float32)
        params.append((w, b, gamma, beta))
    return params


# ----------------------------------------------------------------------------
# Pure-JAX reference (same math) for a sanity check.
#   conv_dtype=jnp.bfloat16 mirrors the kernel's bf16 MXU operands (f32 accum).
# ----------------------------------------------------------------------------
def reference_forward(x_nchw, params, depth, conv_dtype=jnp.float32):
    out = x_nchw.astype(jnp.float32)
    for i, (w, b, g, be) in enumerate(params):
        conv = lax.conv_general_dilated(
            out.astype(conv_dtype), w.astype(conv_dtype),
            window_strides=(1, 1), padding=((1, 1), (1, 1)),
            dimension_numbers=("NCHW", "OIHW", "NCHW"),
            preferred_element_type=jnp.float32,
            precision=lax.Precision.HIGHEST)
        out = conv + b[None, :, None, None]
        mean = jnp.mean(out, axis=(0, 2, 3), keepdims=True)
        var = jnp.mean((out - mean) ** 2, axis=(0, 2, 3), keepdims=True)
        out = (out - mean) * lax.rsqrt(var + 1e-5)
        out = out * g[None, :, None, None] + be[None, :, None, None]
        out = jnp.maximum(out, 0.0)
        if i < 4:
            n, c, h, wd = out.shape
            out = out.reshape(n, c, h // 2, 2, wd // 2, 2).max(axis=(3, 5))
    return out.reshape(out.shape[0], -1)


if __name__ == "__main__":
    depth = 4
    outdim = 16
    key = jax.random.PRNGKey(0)
    kx, kp = jax.random.split(key)

    x = jax.random.normal(kx, (2, 3, 16, 16), jnp.float32)   # NCHW, like PyTorch
    params = init_params(kp, depth, outdim)
    prep = prepare_params(params, in_ch=3, in_h=16, in_w=16)

    out = jax.block_until_ready(convnet_forward(x, prep))
    ref_bf16 = jax.block_until_ready(
        reference_forward(x, params, depth, conv_dtype=jnp.bfloat16))
    ref_f32 = jax.block_until_ready(
        reference_forward(x, params, depth, conv_dtype=jnp.float32))

    assert out.shape == ref_f32.shape, (out.shape, ref_f32.shape)
    assert bool(jnp.all(jnp.isfinite(out)))
    err_matched = float(jnp.max(jnp.abs(out - ref_bf16)))   # same bf16-conv math
    err_full = float(jnp.max(jnp.abs(out - ref_f32)))       # vs full-f32 module
    assert err_matched < 1e-2, f"kernel vs bf16-matched reference: {err_matched}"
    assert err_full < 2.5e-1, f"kernel vs f32 reference: {err_full}"
    print("KERNEL_OK")
</pallas_src>

<mosaic_0001>
module attributes {stable_mosaic.version = 11 : i64} {
  func.func @fused_convnet_kernel(%arg0: i32, %arg1: memref<2x16x48xf32, #tpu.memory_space<vmem>>, %arg2: memref<144x256xbf16, #tpu.memory_space<vmem>>, %arg3: memref<384x128xbf16, #tpu.memory_space<vmem>>, %arg4: memref<192x64xbf16, #tpu.memory_space<vmem>>, %arg5: memref<96x32xbf16, #tpu.memory_space<vmem>>, %arg6: memref<4x256xf32, #tpu.memory_space<vmem>>, %arg7: memref<4x256xf32, #tpu.memory_space<vmem>>, %arg8: memref<2x1x16xf32, #tpu.memory_space<vmem>>, %arg9: memref<2x18x128xf32, #tpu.memory_space<vmem>>, %arg10: memref<2x16x128xf32, #tpu.memory_space<vmem>>) attributes {dimension_semantics = [#tpu.dimension_semantics<arbitrary>], iteration_bounds = array<i64: 1>, scalar_prefetch = 0 : i64, scratch_operands = 2 : i64, tpu.core_type = #tpu.core_type<tc>, window_params = [{pipeline_mode = #tpu.pipeline_mode<synchronous>, transform_indices = @transform_0, window_bounds = array<i64: 2, 16, 48>}, {pipeline_mode = #tpu.pipeline_mode<synchronous>, transform_indices = @transform_1, window_bounds = array<i64: 144, 256>}, {pipeline_mode = #tpu.pipeline_mode<synchronous>, transform_indices = @transform_2, window_bounds = array<i64: 384, 128>}, {pipeline_mode = #tpu.pipeline_mode<synchronous>, transform_indices = @transform_3, window_bounds = array<i64: 192, 64>}, {pipeline_mode = #tpu.pipeline_mode<synchronous>, transform_indices = @transform_4, window_bounds = array<i64: 96, 32>}, {pipeline_mode = #tpu.pipeline_mode<synchronous>, transform_indices = @transform_5, window_bounds = array<i64: 4, 256>}, {pipeline_mode = #tpu.pipeline_mode<synchronous>, transform_indices = @transform_6, window_bounds = array<i64: 4, 256>}, {pipeline_mode = #tpu.pipeline_mode<synchronous>, transform_indices = @transform_7, window_bounds = array<i64: 2, 1, 16>}]} {
    %c0 = arith.constant 0 : index
    %c0_0 = arith.constant 0 : index
    %c0_1 = arith.constant 0 : index
    %0 = vector.load %arg1[%c0, %c0_0, %c0_1] : memref<2x16x48xf32, #tpu.memory_space<vmem>>, vector<2x16x48xf32>
    %cst = arith.constant 0.000000e+00 : f32
    %1 = vector.broadcast %cst : f32 to vector<2x1x48xf32>
    %c0_2 = arith.constant 0 : index
    %c0_3 = arith.constant 0 : index
    %c0_4 = arith.constant 0 : index
    %2 = vector.load %arg9[%c0_2, %c0_3, %c0_4] : memref<2x18x128xf32, #tpu.memory_space<vmem>>, vector<2x1x48xf32>
    tpu.vector_store %arg9[%c0_2, %c0_3, %c0_4], %1 {strides = array<i32>} : memref<2x18x128xf32, #tpu.memory_space<vmem>>, vector<2x1x48xf32>,
    %c0_5 = arith.constant 0 : index
    %c17 = arith.constant 17 : index
    %c0_6 = arith.constant 0 : index
    %3 = vector.load %arg9[%c0_5, %c17, %c0_6] : memref<2x18x128xf32, #tpu.memory_space<vmem>>, vector<2x1x48xf32>
    tpu.vector_store %arg9[%c0_5, %c17, %c0_6], %1 {strides = array<i32>} : memref<2x18x128xf32, #tpu.memory_space<vmem>>, vector<2x1x48xf32>,
    %c0_7 = arith.constant 0 : index
    %c1 = arith.constant 1 : index
    %c0_8 = arith.constant 0 : index
    %4 = vector.load %arg9[%c0_7, %c1, %c0_8] : memref<2x18x128xf32, #tpu.memory_space<vmem>>, vector<2x16x48xf32>
    tpu.vector_store %arg9[%c0_7, %c1, %c0_8], %0 {strides = array<i32>} : memref<2x18x128xf32, #tpu.memory_space<vmem>>, vector<2x16x48xf32>,
    %c0_9 = arith.constant 0 : index
    %c0_10 = arith.constant 0 : index
    %c0_11 = arith.constant 0 : index
    %5 = vector.load %arg9[%c0_9, %c0_10, %c0_11] : memref<2x18x128xf32, #tpu.memory_space<vmem>>, vector<2x16x48xf32>
    %c0_12 = arith.constant 0 : index
    %c1_13 = arith.constant 1 : index
    %c0_14 = arith.constant 0 : index
    %6 = vector.load %arg9[%c0_12, %c1_13, %c0_14] : memref<2x18x128xf32, #tpu.memory_space<vmem>>, vector<2x16x48xf32>
    %c0_15 = arith.constant 0 : index
    %c2 = arith.constant 2 : index
    %c0_16 = arith.constant 0 : index
    %7 = vector.load %arg9[%c0_15, %c2, %c0_16] : memref<2x18x128xf32, #tpu.memory_space<vmem>>, vector<2x16x48xf32>
    %8 = tpu.concatenate %5, %6, %7 in 2 : vector<2x16x48xf32>, vector<2x16x48xf32>, vector<2x16x48xf32> -> vector<2x16x144xf32>
    %9 = vector.shape_cast %8 : vector<2x16x144xf32> to vector<32x144xf32>
    %10 = arith.truncf %9 : vector<32x144xf32> to vector<32x144xbf16>
    %c0_17 = arith.constant 0 : index
    %c0_18 = arith.constant 0 : index
    %11 = vector.load %arg2[%c0_17, %c0_18] : memref<144x256xbf16, #tpu.memory_space<vmem>>, vector<144x256xbf16>
    %cst_19 = arith.constant dense<0.000000e+00> : vector<32x256xf32>
    %12 = tpu.matmul %10, %11, %cst_19 {dimension_numbers = #tpu.dot_dimension_numbers<[1], [0], [0], [1], [0, 0, 1, 1], [], []>} : vector<32x144xbf16>, vector<144x256xbf16>, vector<32x256xf32> -> vector<32x256xf32>
    %cst_20 = arith.constant dense<0.000000e+00> : vector<256xf32>
    %13 = vector.multi_reduction <add>, %12, %cst_20 [0] : vector<32x256xf32> to vector<256xf32>
    %14 = vector.shape_cast %13 : vector<256xf32> to vector<1x256xf32>
    %c16_i32 = arith.constant 16 : i32
    %15 = tpu.dynamic_rotate %14 by %c16_i32 dim 1 : vector<1x256xf32>, i32 -> vector<1x256xf32>
    %16 = arith.addf %14, %15 : vector<1x256xf32>
    %c32_i32 = arith.constant 32 : i32
    %17 = tpu.dynamic_rotate %16 by %c32_i32 dim 1 : vector<1x256xf32>, i32 -> vector<1x256xf32>
    %18 = arith.addf %16, %17 : vector<1x256xf32>
    %c64_i32 = arith.constant 64 : i32
    %19 = tpu.dynamic_rotate %18 by %c64_i32 dim 1 : vector<1x256xf32>, i32 -> vector<1x256xf32>
    %20 = arith.addf %18, %19 : vector<1x256xf32>
    %c128_i32 = arith.constant 128 : i32
    %21 = tpu.dynamic_rotate %20 by %c128_i32 dim 1 : vector<1x256xf32>, i32 -> vector<1x256xf32>
    %22 = arith.addf %20, %21 : vector<1x256xf32>
    %23 = arith.mulf %12, %12 : vector<32x256xf32>
    %cst_21 = arith.constant dense<0.000000e+00> : vector<256xf32>
    %24 = vector.multi_reduction <add>, %23, %cst_21 [0] : vector<32x256xf32> to vector<256xf32>
    %25 = vector.shape_cast %24 : vector<256xf32> to vector<1x256xf32>
    %c16_i32_22 = arith.constant 16 : i32
    %26 = tpu.dynamic_rotate %25 by %c16_i32_22 dim 1 : vector<1x256xf32>, i32 -> vector<1x256xf32>
    %27 = arith.addf %25, %26 : vector<1x256xf32>
    %c32_i32_23 = arith.constant 32 : i32
    %28 = tpu.dynamic_rotate %27 by %c32_i32_23 dim 1 : vector<1x256xf32>, i32 -> vector<1x256xf32>
    %29 = arith.addf %27, %28 : vector<1x256xf32>
    %c64_i32_24 = arith.constant 64 : i32
    %30 = tpu.dynamic_rotate %29 by %c64_i32_24 dim 1 : vector<1x256xf32>, i32 -> vector<1x256xf32>
    %31 = arith.addf %29, %30 : vector<1x256xf32>
    %c128_i32_25 = arith.constant 128 : i32
    %32 = tpu.dynamic_rotate %31 by %c128_i32_25 dim 1 : vector<1x256xf32>, i32 -> vector<1x256xf32>
    %33 = arith.addf %31, %32 : vector<1x256xf32>
    %cst_26 = arith.constant 0.001953125 : f32
    %34 = vector.broadcast %cst_26 : f32 to vector<1x256xf32>
    %35 = arith.mulf %22, %34 : vector<1x256xf32>
    %cst_27 = arith.constant 0.001953125 : f32
    %36 = vector.broadcast %cst_27 : f32 to vector<1x256xf32>
    %37 = arith.mulf %33, %36 : vector<1x256xf32>
    %38 = arith.mulf %35, %35 : vector<1x256xf32>
    %39 = arith.subf %37, %38 : vector<1x256xf32>
    %c0_28 = arith.constant 0 : index
    %c0_29 = arith.constant 0 : index
    %40 = vector.load %arg6[%c0_28, %c0_29] : memref<4x256xf32, #tpu.memory_space<vmem>>, vector<1x256xf32>
    %c0_30 = arith.constant 0 : index
    %c0_31 = arith.constant 0 : index
    %41 = vector.load %arg7[%c0_30, %c0_31] : memref<4x256xf32, #tpu.memory_space<vmem>>, vector<1x256xf32>
    %cst_32 = arith.constant 9.99999974E-6 : f32
    %42 = vector.broadcast %cst_32 : f32 to vector<1x256xf32>
    %43 = arith.addf %39, %42 : vector<1x256xf32>
    %44 = math.rsqrt %43 : vector<1x256xf32>
    %45 = arith.mulf %40, %44 : vector<1x256xf32>
    %46 = arith.mulf %35, %45 : vector<1x256xf32>
    %47 = arith.subf %41, %46 : vector<1x256xf32>
    %48 = vector.broadcast %45 : vector<1x256xf32> to vector<32x256xf32>
    %49 = arith.mulf %12, %48 : vector<32x256xf32>
    %50 = vector.broadcast %47 : vector<1x256xf32> to vector<32x256xf32>
    %51 = arith.addf %49, %50 : vector<32x256xf32>
    %cst_33 = arith.constant 0.000000e+00 : f32
    %52 = vector.broadcast %cst_33 : f32 to vector<32x256xf32>
    %53 = arith.maximumf %51, %52 : vector<32x256xf32>
    %54 = vector.extract_strided_slice %53 {offsets = [0, 0], sizes = [32, 240], strides = [1, 1]} : vector<32x256xf32> to vector<32x240xf32>
    %55 = vector.extract_strided_slice %53 {offsets = [0, 16], sizes = [32, 240], strides = [1, 1]} : vector<32x256xf32> to vector<32x240xf32>
    %56 = arith.maximumf %54, %55 : vector<32x240xf32>
    %57 = vector.extract_strided_slice %56 {offsets = [0, 0], sizes = [32, 16], strides = [1, 1]} : vector<32x240xf32> to vector<32x16xf32>
    %58 = vector.extract_strided_slice %56 {offsets = [0, 32], sizes = [32, 16], strides = [1, 1]} : vector<32x240xf32> to vector<32x16xf32>
    %59 = vector.extract_strided_slice %56 {offsets = [0, 64], sizes = [32, 16], strides = [1, 1]} : vector<32x240xf32> to vector<32x16xf32>
    %60 = vector.extract_strided_slice %56 {offsets = [0, 96], sizes = [32, 16], strides = [1, 1]} : vector<32x240xf32> to vector<32x16xf32>
    %61 = vector.extract_strided_slice %56 {offsets = [0, 128], sizes = [32, 16], strides = [1, 1]} : vector<32x240xf32> to vector<32x16xf32>
    %62 = vector.extract_strided_slice %56 {offsets = [0, 160], sizes = [32, 16], strides = [1, 1]} : vector<32x240xf32> to vector<32x16xf32>
    %63 = vector.extract_strided_slice %56 {offsets = [0, 192], sizes = [32, 16], strides = [1, 1]} : vector<32x240xf32> to vector<32x16xf32>
    %64 = vector.extract_strided_slice %56 {offsets = [0, 224], sizes = [32, 16], strides = [1, 1]} : vector<32x240xf32> to vector<32x16xf32>
    %65 = tpu.concatenate %57, %58, %59, %60, %61, %62, %63, %64 in 1 : vector<32x16xf32>, vector<32x16xf32>, vector<32x16xf32>, vector<32x16xf32>, vector<32x16xf32>, vector<32x16xf32>, vector<32x16xf32>, vector<32x16xf32> -> vector<32x128xf32>
    %66 = vector.shape_cast %65 : vector<32x128xf32> to vector<2x16x128xf32>
    %c0_34 = arith.constant 0 : index
    %c0_35 = arith.constant 0 : index
    %c0_36 = arith.constant 0 : index
    %67 = vector.load %arg10[%c0_34, %c0_35, %c0_36] : memref<2x16x128xf32, #tpu.memory_space<vmem>>, vector<2x16x128xf32>
    tpu.vector_store %arg10[%c0_34, %c0_35, %c0_36], %66 {strides = array<i32>} : memref<2x16x128xf32, #tpu.memory_space<vmem>>, vector<2x16x128xf32>,
    %c0_37 = arith.constant 0 : index
    %c0_38 = arith.constant 0 : index
    %c0_39 = arith.constant 0 : index
    %68 = tpu.strided_load %arg10[%c0_37, %c0_38, %c0_39] {strides = array<i32: 1, 2, 1>} : memref<2x16x128xf32, #tpu.memory_space<vmem>>, vector<2x8x128xf32>
    %c0_40 = arith.constant 0 : index
    %c1_41 = arith.constant 1 : index
    %c0_42 = arith.constant 0 : index
    %69 = tpu.strided_load %arg10[%c0_40, %c1_41, %c0_42] {strides = array<i32: 1, 2, 1>} : memref<2x16x128xf32, #tpu.memory_space<vmem>>, vector<2x8x128xf32>
    %70 = arith.maximumf %68, %69 : vector<2x8x128xf32>
    %cst_43 = arith.constant 0.000000e+00 : f32
    %71 = vector.broadcast %cst_43 : f32 to vector<2x1x128xf32>
    %c0_44 = arith.constant 0 : index
    %c0_45 = arith.constant 0 : index
    %c0_46 = arith.constant 0 : index
    %72 = vector.load %arg9[%c0_44, %c0_45, %c0_46] : memref<2x18x128xf32, #tpu.memory_space<vmem>>, vector<2x1x128xf32>
    tpu.vector_store %arg9[%c0_44, %c0_45, %c0_46], %71 {strides = array<i32>} : memref<2x18x128xf32, #tpu.memory_space<vmem>>, vector<2x1x128xf32>,
    %c0_47 = arith.constant 0 : index
    %c9 = arith.constant 9 : index
    %c0_48 = arith.constant 0 : index
    %73 = vector.load %arg9[%c0_47, %c9, %c0_48] : memref<2x18x128xf32, #tpu.memory_space<vmem>>, vector<2x1x128xf32>
    tpu.vector_store %arg9[%c0_47, %c9, %c0_48], %71 {strides = array<i32>} : memref<2x18x128xf32, #tpu.memory_space<vmem>>, vector<2x1x128xf32>,
    %c0_49 = arith.constant 0 : index
    %c1_50 = arith.constant 1 : index
    %c0_51 = arith.constant 0 : index
    %74 = vector.load %arg9[%c0_49, %c1_50, %c0_51] : memref<2x18x128xf32, #tpu.memory_space<vmem>>, vector<2x8x128xf32>
    tpu.vector_store %arg9[%c0_49, %c1_50, %c0_51], %70 {strides = array<i32>} : memref<2x18x128xf32, #tpu.memory_space<vmem>>, vector<2x8x128xf32>,
    %c0_52 = arith.constant 0 : index
    %c0_53 = arith.constant 0 : index
    %c0_54 = arith.constant 0 : index
    %75 = vector.load %arg9[%c0_52, %c0_53, %c0_54] : memref<2x18x128xf32, #tpu.memory_space<vmem>>, vector<2x8x128xf32>
    %c0_55 = arith.constant 0 : index
    %c1_56 = arith.constant 1 : index
    %c0_57 = arith.constant 0 : index
    %76 = vector.load %arg9[%c0_55, %c1_56, %c0_57] : memref<2x18x128xf32, #tpu.memory_space<vmem>>, vector<2x8x128xf32>
    %c0_58 = arith.constant 0 : index
    %c2_59 = arith.constant 2 : index
    %c0_60 = arith.constant 0 : index
    %77 = vector.load %arg9[%c0_58, %c2_59, %c0_60] : memref<2x18x128xf32, #tpu.memory_space<vmem>>, vector<2x8x128xf32>
    %78 = tpu.concatenate %75, %76, %77 in 2 : vector<2x8x128xf32>, vector<2x8x128xf32>, vector<2x8x128xf32> -> vector<2x8x384xf32>
    %79 = vector.shape_cast %78 : vector<2x8x384xf32> to vector<16x384xf32>
    %80 = arith.truncf %79 : vector<16x384xf32> to vector<16x384xbf16>
    %c0_61 = arith.constant 0 : index
    %c0_62 = arith.constant 0 : index
    %81 = vector.load %arg3[%c0_61, %c0_62] : memref<384x128xbf16, #tpu.memory_space<vmem>>, vector<384x128xbf16>
    %cst_63 = arith.constant dense<0.000000e+00> : vector<16x128xf32>
    %82 = tpu.matmul %80, %81, %cst_63 {dimension_numbers = #tpu.dot_dimension_numbers<[1], [0], [0], [1], [0, 0, 1, 1], [], []>} : vector<16x384xbf16>, vector<384x128xbf16>, vector<16x128xf32> -> vector<16x128xf32>
    %cst_64 = arith.constant dense<0.000000e+00> : vector<128xf32>
    %83 = vector.multi_reduction <add>, %82, %cst_64 [0] : vector<16x128xf32> to vector<128xf32>
    %84 = vector.shape_cast %83 : vector<128xf32> to vector<1x128xf32>
    %c16_i32_65 = arith.constant 16 : i32
    %85 = tpu.dynamic_rotate %84 by %c16_i32_65 dim 1 : vector<1x128xf32>, i32 -> vector<1x128xf32>
    %86 = arith.addf %84, %85 : vector<1x128xf32>
    %c32_i32_66 = arith.constant 32 : i32
    %87 = tpu.dynamic_rotate %86 by %c32_i32_66 dim 1 : vector<1x128xf32>, i32 -> vector<1x128xf32>
    %88 = arith.addf %86, %87 : vector<1x128xf32>
    %c64_i32_67 = arith.constant 64 : i32
    %89 = tpu.dynamic_rotate %88 by %c64_i32_67 dim 1 : vector<1x128xf32>, i32 -> vector<1x128xf32>
    %90 = arith.addf %88, %89 : vector<1x128xf32>
    %91 = arith.mulf %82, %82 : vector<16x128xf32>
    %cst_68 = arith.constant dense<0.000000e+00> : vector<128xf32>
    %92 = vector.multi_reduction <add>, %91, %cst_68 [0] : vector<16x128xf32> to vector<128xf32>
    %93 = vector.shape_cast %92 : vector<128xf32> to vector<1x128xf32>
    %c16_i32_69 = arith.constant 16 : i32
    %94 = tpu.dynamic_rotate %93 by %c16_i32_69 dim 1 : vector<1x128xf32>, i32 -> vector<1x128xf32>
    %95 = arith.addf %93, %94 : vector<1x128xf32>
    %c32_i32_70 = arith.constant 32 : i32
    %96 = tpu.dynamic_rotate %95 by %c32_i32_70 dim 1 : vector<1x128xf32>, i32 -> vector<1x128xf32>
    %97 = arith.addf %95, %96 : vector<1x128xf32>
    %c64_i32_71 = arith.constant 64 : i32
    %98 = tpu.dynamic_rotate %97 by %c64_i32_71 dim 1 : vector<1x128xf32>, i32 -> vector<1x128xf32>
    %99 = arith.addf %97, %98 : vector<1x128xf32>
    %cst_72 = arith.constant 7.812500e-03 : f32
    %100 = vector.broadcast %cst_72 : f32 to vector<1x128xf32>
    %101 = arith.mulf %90, %100 : vector<1x128xf32>
    %cst_73 = arith.constant 7.812500e-03 : f32
    %102 = vector.broadcast %cst_73 : f32 to vector<1x128xf32>
    %103 = arith.mulf %99, %102 : vector<1x128xf32>
    %104 = arith.mulf %101, %101 : vector<1x128xf32>
    %105 = arith.subf %103, %104 : vector<1x128xf32>
    %c1_74 = arith.constant 1 : index
    %c0_75 = arith.constant 0 : index
    %106 = vector.load %arg6[%c1_74, %c0_75] : memref<4x256xf32, #tpu.memory_space<vmem>>, vector<1x128xf32>
    %c1_76 = arith.constant 1 : index
    %c0_77 = arith.constant 0 : index
    %107 = vector.load %arg7[%c1_76, %c0_77] : memref<4x256xf32, #tpu.memory_space<vmem>>, vector<1x128xf32>
    %cst_78 = arith.constant 9.99999974E-6 : f32
    %108 = vector.broadcast %cst_78 : f32 to vector<1x128xf32>
    %109 = arith.addf %105, %108 : vector<1x128xf32>
    %110 = math.rsqrt %109 : vector<1x128xf32>
    %111 = arith.mulf %106, %110 : vector<1x128xf32>
    %112 = arith.mulf %101, %111 : vector<1x128xf32>
    %113 = arith.subf %107, %112 : vector<1x128xf32>
    %114 = vector.broadcast %111 : vector<1x128xf32> to vector<16x128xf32>
    %115 = arith.mulf %82, %114 : vector<16x128xf32>
    %116 = vector.broadcast %113 : vector<1x128xf32> to vector<16x128xf32>
    %117 = arith.addf %115, %116 : vector<16x128xf32>
    %cst_79 = arith.constant 0.000000e+00 : f32
    %118 = vector.broadcast %cst_79 : f32 to vector<16x128xf32>
    %119 = arith.maximumf %117, %118 : vector<16x128xf32>
    %120 = vector.extract_strided_slice %119 {offsets = [0, 0], sizes = [16, 112], strides = [1, 1]} : vector<16x128xf32> to vector<16x112xf32>
    %121 = vector.extract_strided_slice %119 {offsets = [0, 16], sizes = [16, 112], strides = [1, 1]} : vector<16x128xf32> to vector<16x112xf32>
    %122 = arith.maximumf %120, %121 : vector<16x112xf32>
    %123 = vector.extract_strided_slice %122 {offsets = [0, 0], sizes = [16, 16], strides = [1, 1]} : vector<16x112xf32> to vector<16x16xf32>
    %124 = vector.extract_strided_slice %122 {offsets = [0, 32], sizes = [16, 16], strides = [1, 1]} : vector<16x112xf32> to vector<16x16xf32>
    %125 = vector.extract_strided_slice %122 {offsets = [0, 64], sizes = [16, 16], strides = [1, 1]} : vector<16x112xf32> to vector<16x16xf32>
    %126 = vector.extract_strided_slice %122 {offsets = [0, 96], sizes = [16, 16], strides = [1, 1]} : vector<16x112xf32> to vector<16x16xf32>
    %127 = tpu.concatenate %123, %124, %125, %126 in 1 : vector<16x16xf32>, vector<16x16xf32>, vector<16x16xf32>, vector<16x16xf32> -> vector<16x64xf32>
    %128 = vector.shape_cast %127 : vector<16x64xf32> to vector<2x8x64xf32>
    %c0_80 = arith.constant 0 : index
    %c0_81 = arith.constant 0 : index
    %c0_82 = arith.constant 0 : index
    %129 = vector.load %arg10[%c0_80, %c0_81, %c0_82] : memref<2x16x128xf32, #tpu.memory_space<vmem>>, vector<2x8x64xf32>
    tpu.vector_store %arg10[%c0_80, %c0_81, %c0_82], %128 {strides = array<i32>} : memref<2x16x128xf32, #tpu.memory_space<vmem>>, vector<2x8x64xf32>,
    %c0_83 = arith.constant 0 : index
    %c0_84 = arith.constant 0 : index
    %c0_85 = arith.constant 0 : index
    %130 = tpu.strided_load %arg10[%c0_83, %c0_84, %c0_85] {strides = array<i32: 1, 2, 1>} : memref<2x16x128xf32, #tpu.memory_space<vmem>>, vector<2x4x64xf32>
    %c0_86 = arith.constant 0 : index
    %c1_87 = arith.constant 1 : index
    %c0_88 = arith.constant 0 : index
    %131 = tpu.strided_load %arg10[%c0_86, %c1_87, %c0_88] {strides = array<i32: 1, 2, 1>} : memref<2x16x128xf32, #tpu.memory_space<vmem>>, vector<2x4x64xf32>
    %132 = arith.maximumf %130, %131 : vector<2x4x64xf32>
    %cst_89 = arith.constant 0.000000e+00 : f32
    %133 = vector.broadcast %cst_89 : f32 to vector<2x1x64xf32>
    %c0_90 = arith.constant 0 : index
    %c0_91 = arith.constant 0 : index
    %c0_92 = arith.constant 0 : index
    %134 = vector.load %arg9[%c0_90, %c0_91, %c0_92] : memref<2x18x128xf32, #tpu.memory_space<vmem>>, vector<2x1x64xf32>
    tpu.vector_store %arg9[%c0_90, %c0_91, %c0_92], %133 {strides = array<i32>} : memref<2x18x128xf32, #tpu.memory_space<vmem>>, vector<2x1x64xf32>,
    %c0_93 = arith.constant 0 : index
    %c5 = arith.constant 5 : index
    %c0_94 = arith.constant 0 : index
    %135 = vector.load %arg9[%c0_93, %c5, %c0_94] : memref<2x18x128xf32, #tpu.memory_space<vmem>>, vector<2x1x64xf32>
    tpu.vector_store %arg9[%c0_93, %c5, %c0_94], %133 {strides = array<i32>} : memref<2x18x128xf32, #tpu.memory_space<vmem>>, vector<2x1x64xf32>,
    %c0_95 = arith.constant 0 : index
    %c1_96 = arith.constant 1 : index
    %c0_97 = arith.constant 0 : index
    %136 = vector.load %arg9[%c0_95, %c1_96, %c0_97] : memref<2x18x128xf32, #tpu.memory_space<vmem>>, vector<2x4x64xf32>
    tpu.vector_store %arg9[%c0_95, %c1_96, %c0_97], %132 {strides = array<i32>} : memref<2x18x128xf32, #tpu.memory_space<vmem>>, vector<2x4x64xf32>,
    %c0_98 = arith.constant 0 : index
    %c0_99 = arith.constant 0 : index
    %c0_100 = arith.constant 0 : index
    %137 = vector.load %arg9[%c0_98, %c0_99, %c0_100] : memref<2x18x128xf32, #tpu.memory_space<vmem>>, vector<2x4x64xf32>
    %c0_101 = arith.constant 0 : index
    %c1_102 = arith.constant 1 : index
    %c0_103 = arith.constant 0 : index
    %138 = vector.load %arg9[%c0_101, %c1_102, %c0_103] : memref<2x18x128xf32, #tpu.memory_space<vmem>>, vector<2x4x64xf32>
    %c0_104 = arith.constant 0 : index
    %c2_105 = arith.constant 2 : index
    %c0_106 = arith.constant 0 : index
    %139 = vector.load %arg9[%c0_104, %c2_105, %c0_106] : memref<2x18x128xf32, #tpu.memory_space<vmem>>, vector<2x4x64xf32>
    %140 = tpu.concatenate %137, %138, %139 in 2 : vector<2x4x64xf32>, vector<2x4x64xf32>, vector<2x4x64xf32> -> vector<2x4x192xf32>
    %141 = vector.shape_cast %140 : vector<2x4x192xf32> to vector<8x192xf32>
    %142 = arith.truncf %141 : vector<8x192xf32> to vector<8x192xbf16>
    %c0_107 = arith.constant 0 : index
    %c0_108 = arith.constant 0 : index
    %143 = vector.load %arg4[%c0_107, %c0_108] : memref<192x64xbf16, #tpu.memory_space<vmem>>, vector<192x64xbf16>
    %cst_109 = arith.constant dense<0.000000e+00> : vector<8x64xf32>
    %144 = tpu.matmul %142, %143, %cst_109 {dimension_numbers = #tpu.dot_dimension_numbers<[1], [0], [0], [1], [0, 0, 1, 1], [], []>} : vector<8x192xbf16>, vector<192x64xbf16>, vector<8x64xf32> -> vector<8x64xf32>
    %cst_110 = arith.constant dense<0.000000e+00> : vector<64xf32>
    %145 = vector.multi_reduction <add>, %144, %cst_110 [0] : vector<8x64xf32> to vector<64xf32>
    %146 = vector.shape_cast %145 : vector<64xf32> to vector<1x64xf32>
    %147 = vector.extract_strided_slice %146 {offsets = [0, 16], sizes = [1, 48], strides = [1, 1]} : vector<1x64xf32> to vector<1x48xf32>
    %148 = vector.extract_strided_slice %146 {offsets = [0, 0], sizes = [1, 16], strides = [1, 1]} : vector<1x64xf32> to vector<1x16xf32>
    %149 = tpu.concatenate %147, %148 in 1 : vector<1x48xf32>, vector<1x16xf32> -> vector<1x64xf32>
    %150 = arith.addf %146, %149 : vector<1x64xf32>
    %151 = vector.extract_strided_slice %150 {offsets = [0, 32], sizes = [1, 32], strides = [1, 1]} : vector<1x64xf32> to vector<1x32xf32>
    %152 = vector.extract_strided_slice %150 {offsets = [0, 0], sizes = [1, 32], strides = [1, 1]} : vector<1x64xf32> to vector<1x32xf32>
    %153 = tpu.concatenate %151, %152 in 1 : vector<1x32xf32>, vector<1x32xf32> -> vector<1x64xf32>
    %154 = arith.addf %150, %153 : vector<1x64xf32>
    %155 = arith.mulf %144, %144 : vector<8x64xf32>
    %cst_111 = arith.constant dense<0.000000e+00> : vector<64xf32>
    %156 = vector.multi_reduction <add>, %155, %cst_111 [0] : vector<8x64xf32> to vector<64xf32>
    %157 = vector.shape_cast %156 : vector<64xf32> to vector<1x64xf32>
    %158 = vector.extract_strided_slice %157 {offsets = [0, 16], sizes = [1, 48], strides = [1, 1]} : vector<1x64xf32> to vector<1x48xf32>
    %159 = vector.extract_strided_slice %157 {offsets = [0, 0], sizes = [1, 16], strides = [1, 1]} : vector<1x64xf32> to vector<1x16xf32>
    %160 = tpu.concatenate %158, %159 in 1 : vector<1x48xf32>, vector<1x16xf32> -> vector<1x64xf32>
    %161 = arith.addf %157, %160 : vector<1x64xf32>
    %162 = vector.extract_strided_slice %161 {offsets = [0, 32], sizes = [1, 32], strides = [1, 1]} : vector<1x64xf32> to vector<1x32xf32>
    %163 = vector.extract_strided_slice %161 {offsets = [0, 0], sizes = [1, 32], strides = [1, 1]} : vector<1x64xf32> to vector<1x32xf32>
    %164 = tpu.concatenate %162, %163 in 1 : vector<1x32xf32>, vector<1x32xf32> -> vector<1x64xf32>
    %165 = arith.addf %161, %164 : vector<1x64xf32>
    %cst_112 = arith.constant 3.125000e-02 : f32
    %166 = vector.broadcast %cst_112 : f32 to vector<1x64xf32>
    %167 = arith.mulf %154, %166 : vector<1x64xf32>
    %cst_113 = arith.constant 3.125000e-02 : f32
    %168 = vector.broadcast %cst_113 : f32 to vector<1x64xf32>
    %169 = arith.mulf %165, %168 : vector<1x64xf32>
    %170 = arith.mulf %167, %167 : vector<1x64xf32>
    %171 = arith.subf %169, %170 : vector<1x64xf32>
    %c2_114 = arith.constant 2 : index
    %c0_115 = arith.constant 0 : index
    %172 = vector.load %arg6[%c2_114, %c0_115] : memref<4x256xf32, #tpu.memory_space<vmem>>, vector<1x64xf32>
    %c2_116 = arith.constant 2 : index
    %c0_117 = arith.constant 0 : index
    %173 = vector.load %arg7[%c2_116, %c0_117] : memref<4x256xf32, #tpu.memory_space<vmem>>, vector<1x64xf32>
    %cst_118 = arith.constant 9.99999974E-6 : f32
    %174 = vector.broadcast %cst_118 : f32 to vector<1x64xf32>
    %175 = arith.addf %171, %174 : vector<1x64xf32>
    %176 = math.rsqrt %175 : vector<1x64xf32>
    %177 = arith.mulf %172, %176 : vector<1x64xf32>
    %178 = arith.mulf %167, %177 : vector<1x64xf32>
    %179 = arith.subf %173, %178 : vector<1x64xf32>
    %180 = vector.broadcast %177 : vector<1x64xf32> to vector<8x64xf32>
    %181 = arith.mulf %144, %180 : vector<8x64xf32>
    %182 = vector.broadcast %179 : vector<1x64xf32> to vector<8x64xf32>
    %183 = arith.addf %181, %182 : vector<8x64xf32>
    %cst_119 = arith.constant 0.000000e+00 : f32
    %184 = vector.broadcast %cst_119 : f32 to vector<8x64xf32>
    %185 = arith.maximumf %183, %184 : vector<8x64xf32>
    %186 = vector.extract_strided_slice %185 {offsets = [0, 0], sizes = [8, 48], strides = [1, 1]} : vector<8x64xf32> to vector<8x48xf32>
    %187 = vector.extract_strided_slice %185 {offsets = [0, 16], sizes = [8, 48], strides = [1, 1]} : vector<8x64xf32> to vector<8x48xf32>
    %188 = arith.maximumf %186, %187 : vector<8x48xf32>
    %189 = vector.extract_strided_slice %188 {offsets = [0, 0], sizes = [8, 16], strides = [1, 1]} : vector<8x48xf32> to vector<8x16xf32>
    %190 = vector.extract_strided_slice %188 {offsets = [0, 32], sizes = [8, 16], strides = [1, 1]} : vector<8x48xf32> to vector<8x16xf32>
    %191 = tpu.concatenate %189, %190 in 1 : vector<8x16xf32>, vector<8x16xf32> -> vector<8x32xf32>
    %192 = vector.shape_cast %191 : vector<8x32xf32> to vector<2x4x32xf32>
    %c0_120 = arith.constant 0 : index
    %c0_121 = arith.constant 0 : index
    %c0_122 = arith.constant 0 : index
    %193 = vector.load %arg10[%c0_120, %c0_121, %c0_122] : memref<2x16x128xf32, #tpu.memory_space<vmem>>, vector<2x4x32xf32>
    tpu.vector_store %arg10[%c0_120, %c0_121, %c0_122], %192 {strides = array<i32>} : memref<2x16x128xf32, #tpu.memory_space<vmem>>, vector<2x4x32xf32>,
    %c0_123 = arith.constant 0 : index
    %c0_124 = arith.constant 0 : index
    %c0_125 = arith.constant 0 : index
    %194 = tpu.strided_load %arg10[%c0_123, %c0_124, %c0_125] {strides = array<i32: 1, 2, 1>} : memref<2x16x128xf32, #tpu.memory_space<vmem>>, vector<2x2x32xf32>
    %c0_126 = arith.constant 0 : index
    %c1_127 = arith.constant 1 : index
    %c0_128 = arith.constant 0 : index
    %195 = tpu.strided_load %arg10[%c0_126, %c1_127, %c0_128] {strides = array<i32: 1, 2, 1>} : memref<2x16x128xf32, #tpu.memory_space<vmem>>, vector<2x2x32xf32>
    %196 = arith.maximumf %194, %195 : vector<2x2x32xf32>
    %cst_129 = arith.constant 0.000000e+00 : f32
    %197 = vector.broadcast %cst_129 : f32 to vector<2x1x32xf32>
    %c0_130 = arith.constant 0 : index
    %c0_131 = arith.constant 0 : index
    %c0_132 = arith.constant 0 : index
    %198 = vector.load %arg9[%c0_130, %c0_131, %c0_132] : memref<2x18x128xf32, #tpu.memory_space<vmem>>, vector<2x1x32xf32>
    tpu.vector_store %arg9[%c0_130, %c0_131, %c0_132], %197 {strides = array<i32>} : memref<2x18x128xf32, #tpu.memory_space<vmem>>, vector<2x1x32xf32>,
    %c0_133 = arith.constant 0 : index
    %c3 = arith.constant 3 : index
    %c0_134 = arith.constant 0 : index
    %199 = vector.load %arg9[%c0_133, %c3, %c0_134] : memref<2x18x128xf32, #tpu.memory_space<vmem>>, vector<2x1x32xf32>
    tpu.vector_store %arg9[%c0_133, %c3, %c0_134], %197 {strides = array<i32>} : memref<2x18x128xf32, #tpu.memory_space<vmem>>, vector<2x1x32xf32>,
    %c0_135 = arith.constant 0 : index
    %c1_136 = arith.constant 1 : index
    %c0_137 = arith.constant 0 : index
    %200 = vector.load %arg9[%c0_135, %c1_136, %c0_137] : memref<2x18x128xf32, #tpu.memory_space<vmem>>, vector<2x2x32xf32>
    tpu.vector_store %arg9[%c0_135, %c1_136, %c0_137], %196 {strides = array<i32>} : memref<2x18x128xf32, #tpu.memory_space<vmem>>, vector<2x2x32xf32>,
    %c0_138 = arith.constant 0 : index
    %c0_139 = arith.constant 0 : index
    %c0_140 = arith.constant 0 : index
    %201 = vector.load %arg9[%c0_138, %c0_139, %c0_140] : memref<2x18x128xf32, #tpu.memory_space<vmem>>, vector<2x2x32xf32>
    %c0_141 = arith.constant 0 : index
    %c1_142 = arith.constant 1 : index
    %c0_143 = arith.constant 0 : index
    %202 = vector.load %arg9[%c0_141, %c1_142, %c0_143] : memref<2x18x128xf32, #tpu.memory_space<vmem>>, vector<2x2x32xf32>
    %c0_144 = arith.constant 0 : index
    %c2_145 = arith.constant 2 : index
    %c0_146 = arith.constant 0 : index
    %203 = vector.load %arg9[%c0_144, %c2_145, %c0_146] : memref<2x18x128xf32, #tpu.memory_space<vmem>>, vector<2x2x32xf32>
    %204 = tpu.concatenate %201, %202, %203 in 2 : vector<2x2x32xf32>, vector<2x2x32xf32>, vector<2x2x32xf32> -> vector<2x2x96xf32>
    %205 = vector.shape_cast %204 : vector<2x2x96xf32> to vector<4x96xf32>
    %206 = arith.truncf %205 : vector<4x96xf32> to vector<4x96xbf16>
    %c0_147 = arith.constant 0 : index
    %c0_148 = arith.constant 0 : index
    %207 = vector.load %arg5[%c0_147, %c0_148] : memref<96x32xbf16, #tpu.memory_space<vmem>>, vector<96x32xbf16>
    %cst_149 = arith.constant dense<0.000000e+00> : vector<4x32xf32>
    %208 = tpu.matmul %206, %207, %cst_149 {dimension_numbers = #tpu.dot_dimension_numbers<[1], [0], [0], [1], [0, 0, 1, 1], [], []>} : vector<4x96xbf16>, vector<96x32xbf16>, vector<4x32xf32> -> vector<4x32xf32>
    %cst_150 = arith.constant dense<0.000000e+00> : vector<32xf32>
    %209 = vector.multi_reduction <add>, %208, %cst_150 [0] : vector<4x32xf32> to vector<32xf32>
    %210 = vector.shape_cast %209 : vector<32xf32> to vector<1x32xf32>
    %211 = vector.extract_strided_slice %210 {offsets = [0, 16], sizes = [1, 16], strides = [1, 1]} : vector<1x32xf32> to vector<1x16xf32>
    %212 = vector.extract_strided_slice %210 {offsets = [0, 0], sizes = [1, 16], strides = [1, 1]} : vector<1x32xf32> to vector<1x16xf32>
    %213 = tpu.concatenate %211, %212 in 1 : vector<1x16xf32>, vector<1x16xf32> -> vector<1x32xf32>
    %214 = arith.addf %210, %213 : vector<1x32xf32>
    %215 = arith.mulf %208, %208 : vector<4x32xf32>
    %cst_151 = arith.constant dense<0.000000e+00> : vector<32xf32>
    %216 = vector.multi_reduction <add>, %215, %cst_151 [0] : vector<4x32xf32> to vector<32xf32>
    %217 = vector.shape_cast %216 : vector<32xf32> to vector<1x32xf32>
    %218 = vector.extract_strided_slice %217 {offsets = [0, 16], sizes = [1, 16], strides = [1, 1]} : vector<1x32xf32> to vector<1x16xf32>
    %219 = vector.extract_strided_slice %217 {offsets = [0, 0], sizes = [1, 16], strides = [1, 1]} : vector<1x32xf32> to vector<1x16xf32>
    %220 = tpu.concatenate %218, %219 in 1 : vector<1x16xf32>, vector<1x16xf32> -> vector<1x32xf32>
    %221 = arith.addf %217, %220 : vector<1x32xf32>
    %cst_152 = arith.constant 1.250000e-01 : f32
    %222 = vector.broadcast %cst_152 : f32 to vector<1x32xf32>
    %223 = arith.mulf %214, %222 : vector<1x32xf32>
    %cst_153 = arith.constant 1.250000e-01 : f32
    %224 = vector.broadcast %cst_153 : f32 to vector<1x32xf32>
    %225 = arith.mulf %221, %224 : vector<1x32xf32>
    %226 = arith.mulf %223, %223 : vector<1x32xf32>
    %227 = arith.subf %225, %226 : vector<1x32xf32>
    %c3_154 = arith.constant 3 : index
    %c0_155 = arith.constant 0 : index
    %228 = vector.load %arg6[%c3_154, %c0_155] : memref<4x256xf32, #tpu.memory_space<vmem>>, vector<1x32xf32>
    %c3_156 = arith.constant 3 : index
    %c0_157 = arith.constant 0 : index
    %229 = vector.load %arg7[%c3_156, %c0_157] : memref<4x256xf32, #tpu.memory_space<vmem>>, vector<1x32xf32>
    %cst_158 = arith.constant 9.99999974E-6 : f32
    %230 = vector.broadcast %cst_158 : f32 to vector<1x32xf32>
    %231 = arith.addf %227, %230 : vector<1x32xf32>
    %232 = math.rsqrt %231 : vector<1x32xf32>
    %233 = arith.mulf %228, %232 : vector<1x32xf32>
    %234 = arith.mulf %223, %233 : vector<1x32xf32>
    %235 = arith.subf %229, %234 : vector<1x32xf32>
    %236 = vector.broadcast %233 : vector<1x32xf32> to vector<4x32xf32>
    %237 = arith.mulf %208, %236 : vector<4x32xf32>
    %238 = vector.broadcast %235 : vector<1x32xf32> to vector<4x32xf32>
    %239 = arith.addf %237, %238 : vector<4x32xf32>
    %cst_159 = arith.constant 0.000000e+00 : f32
    %240 = vector.broadcast %cst_159 : f32 to vector<4x32xf32>
    %241 = arith.maximumf %239, %240 : vector<4x32xf32>
    %242 = vector.extract_strided_slice %241 {offsets = [0, 0], sizes = [4, 16], strides = [1, 1]} : vector<4x32xf32> to vector<4x16xf32>
    %243 = vector.extract_strided_slice %241 {offsets = [0, 16], sizes = [4, 16], strides = [1, 1]} : vector<4x32xf32> to vector<4x16xf32>
    %244 = arith.maximumf %242, %243 : vector<4x16xf32>
    %245 = vector.shape_cast %244 : vector<4x16xf32> to vector<2x2x16xf32>
    %c0_160 = arith.constant 0 : index
    %c0_161 = arith.constant 0 : index
    %c0_162 = arith.constant 0 : index
    %246 = vector.load %arg10[%c0_160, %c0_161, %c0_162] : memref<2x16x128xf32, #tpu.memory_space<vmem>>, vector<2x2x16xf32>
    tpu.vector_store %arg10[%c0_160, %c0_161, %c0_162], %245 {strides = array<i32>} : memref<2x16x128xf32, #tpu.memory_space<vmem>>, vector<2x2x16xf32>,
    %c0_163 = arith.constant 0 : index
    %c0_164 = arith.constant 0 : index
    %c0_165 = arith.constant 0 : index
    %247 = tpu.strided_load %arg10[%c0_163, %c0_164, %c0_165] {strides = array<i32: 1, 2, 1>} : memref<2x16x128xf32, #tpu.memory_space<vmem>>, vector<2x1x16xf32>
    %c0_166 = arith.constant 0 : index
    %c1_167 = arith.constant 1 : index
    %c0_168 = arith.constant 0 : index
    %248 = tpu.strided_load %arg10[%c0_166, %c1_167, %c0_168] {strides = array<i32: 1, 2, 1>} : memref<2x16x128xf32, #tpu.memory_space<vmem>>, vector<2x1x16xf32>
    %249 = arith.maximumf %247, %248 : vector<2x1x16xf32>
    %c0_169 = arith.constant 0 : index
    %c0_170 = arith.constant 0 : index
    %c0_171 = arith.constant 0 : index
    %250 = vector.load %arg8[%c0_169, %c0_170, %c0_171] : memref<2x1x16xf32, #tpu.memory_space<vmem>>, vector<2x1x16xf32>
    tpu.vector_store %arg8[%c0_169, %c0_170, %c0_171], %249 {strides = array<i32>} : memref<2x1x16xf32, #tpu.memory_space<vmem>>, vector<2x1x16xf32>,
    return
  }
  func.func @transform_0(%arg0: i32) -> (i32, i32, i32) {
    %c0_i32 = arith.constant 0 : i32
    %c0_i32_0 = arith.constant 0 : i32
    %c0_i32_1 = arith.constant 0 : i32
    %c0_i32_2 = arith.constant 0 : i32
    return %c0_i32, %c0_i32_0, %c0_i32_1 : i32, i32, i32
  }
  func.func @transform_1(%arg0: i32) -> (i32, i32) {
    %c0_i32 = arith.constant 0 : i32
    %c0_i32_0 = arith.constant 0 : i32
    %c0_i32_1 = arith.constant 0 : i32
    return %c0_i32, %c0_i32_0 : i32, i32
  }
  func.func @transform_2(%arg0: i32) -> (i32, i32) {
    %c0_i32 = arith.constant 0 : i32
    %c0_i32_0 = arith.constant 0 : i32
    %c0_i32_1 = arith.constant 0 : i32
    return %c0_i32, %c0_i32_0 : i32, i32
  }
  func.func @transform_3(%arg0: i32) -> (i32, i32) {
    %c0_i32 = arith.constant 0 : i32
    %c0_i32_0 = arith.constant 0 : i32
    %c0_i32_1 = arith.constant 0 : i32
    return %c0_i32, %c0_i32_0 : i32, i32
  }
  func.func @transform_4(%arg0: i32) -> (i32, i32) {
    %c0_i32 = arith.constant 0 : i32
    %c0_i32_0 = arith.constant 0 : i32
    %c0_i32_1 = arith.constant 0 : i32
    return %c0_i32, %c0_i32_0 : i32, i32
  }
  func.func @transform_5(%arg0: i32) -> (i32, i32) {
    %c0_i32 = arith.constant 0 : i32
    %c0_i32_0 = arith.constant 0 : i32
    %c0_i32_1 = arith.constant 0 : i32
    return %c0_i32, %c0_i32_0 : i32, i32
  }
  func.func @transform_6(%arg0: i32) -> (i32, i32) {
    %c0_i32 = arith.constant 0 : i32
    %c0_i32_0 = arith.constant 0 : i32
    %c0_i32_1 = arith.constant 0 : i32
    return %c0_i32, %c0_i32_0 : i32, i32
  }
  func.func @transform_7(%arg0: i32) -> (i32, i32, i32) {
    %c0_i32 = arith.constant 0 : i32
    %c0_i32_0 = arith.constant 0 : i32
    %c0_i32_1 = arith.constant 0 : i32
    %c0_i32_2 = arith.constant 0 : i32
    return %c0_i32, %c0_i32_0, %c0_i32_1 : i32, i32, i32
  }
}

</mosaic_0001>

<bundles_post_ra>
// kernel: tpu_custom_call.1
= control target key start
LH: loop header
LB: loop body
LE: loop exit
PB: predicated region body
PF: predicated region fallthrough
CT: control target
= control target key end

     0   :  { %12 = vsyncpa [#allocation5], 0  ;;  %s2392_s0 = inlined_call_operand.vmem [shape: f32[2,16,48], index: 0, kind: input, shape index: {}]   ;;  %s2393_s1 = inlined_call_operand.hbm [shape: bf16[144,256], index: 1, kind: input, shape index: {}]   ;;  %s2394_s2 = inlined_call_operand.vmem [shape: bf16[384,128], index: 2, kind: input, shape index: {}]   ;;  %s2395_s3 = inlined_call_operand.vmem [shape: bf16[192,64], index: 3, kind: input, shape index: {}]   ;;  %s2396_s4 = inlined_call_operand.vmem [shape: bf16[96,32], index: 4, kind: input, shape index: {}]   ;;  %s2397_s5 = inlined_call_operand.vmem [shape: f32[4,256], index: 5, kind: input, shape index: {}]   ;;  %s2398_s6 = inlined_call_operand.vmem [shape: f32[4,256], index: 6, kind: input, shape index: {}]   ;;  %s2399_s7 = inlined_call_operand.hbm [shape: f32[2,1,16], index: 7, kind: output, shape index: {}]  }
   0x1   :  { %13 = vsyncpa [#allocation6], 0  ;;  %s1857_s24 = smov [#allocation4]   ;;  %s1809_s28 = scalar_lea.hbm %s2393_s1, 2304 }
   0x2   :  { %s21_s25 = sshll.u32 %s1857_s24, 4  ;;  %p1810_p0 = scmp.ne.s32.totalorder %s2393_s1, %s1809_s28  ;;  %s22_s25 = int_to_ptr.vmem [resolvable:$true] %s21_s25 }
   0x3   :  { %p1813_p1 = scmp.lt.u32.totalorder %s1809_s28, %s2393_s1 }
   0x5   :  { %p1815_p2 = pnand %p1813_p1, %p1810_p0 }
   0x7   :  { %1818 = shalt.err (!%p1815_p2)
}
   0x8   :  { %s1819_s10 = scalar_lea.vmem %s22_s25, 2304  ;;  %p1824_p4 = scmp.lt.s32.totalorder %s22_s25, %s22_s25 }
   0x9   :  { %p1820_p3 = scmp.ne.s32.totalorder %s22_s25, %s1819_s10  ;;  %p1825_p5 = scmp.lt.s32.totalorder %s1819_s10, %s1819_s10 }
   0xb   :  { %p1826_p6 = por %p1825_p5, %p1824_p4 }
   0xd   :  { %p1827_p7 = pnand %p1826_p6, %p1820_p3 }
   0xf   :  { %1830 = shalt.err (!%p1827_p7)
}
  0x10   :  { %s1858_s11 = smov 128   ;;  %s1859_s12 = smov 8  }
  0x11   :  { %27 = dma.hbm_to_vmem [thread:$0]  %s2393_s1, 2304, %s22_s25, [#allocation5], %s1858_s11, %s1858_s11, %s1859_s12  }
  0x12   :  { %1853 = dma.done.wait [#allocation5], 2304  }
  0x13   :  { %1854 = vsyncadd [#allocation5], 4294964992  ;;  %vm46_vm0 = vcmask 385024   ;;  %v1860_v0 = vmov 0.0   ;;  %vm51_vm1 = vcmask 392192   ;;  %v42_v1 = vld [vmem:[%s2392_s0] sm:$0xff] }
  0x14   :  { %47 = vst.msk [vmem:[#allocation2] sm:$0x1] %vm46_vm0, %v1860_v0  ;;  %48 = vst.msk [vmem:[#allocation2 + $0x18] sm:$0x1] %vm46_vm0, %v1860_v0  ;;  %v43_v2 = vld [vmem:[%s2392_s0 + $0x8] sm:$0xff]  ;;  %v44_v3 = vld [vmem:[%s2392_s0 + $0x10] sm:$0xff] }
  0x15   :  { %49 = vst.msk [vmem:[#allocation2 + $0x11] sm:$0x1] %vm46_vm0, %v1860_v0  ;;  %50 = vst.msk [vmem:[#allocation2 + $0x29] sm:$0x1] %vm46_vm0, %v1860_v0  ;;  %v45_v4 = vld [vmem:[%s2392_s0 + $0x18] sm:$0xff]  ;;  %s1861_s0 = smov 48  }
  0x16   :  { %52 = vst.msk [vmem:[#allocation2 + $0x1] sm:$0xff] %vm51_vm1, %v42_v1  ;;  %53 = vst.msk [vmem:[#allocation2 + $0x9] sm:$0xff] %vm51_vm1, %v43_v2  ;;  %v1731_v5 = vld [vmem:[#allocation4 + $0x4] ss:$8 sps:$4 sm:$0xff]   ;;  %v1733_v6 = vld [vmem:[#allocation4] ss:$8 sps:$4 sm:$0xff]  }
  0x17   :  { %54 = vst.msk [vmem:[#allocation2 + $0x19] sm:$0xff] %vm51_vm1, %v44_v3  ;;  %55 = vst.msk [vmem:[#allocation2 + $0x21] sm:$0xff] %vm51_vm1, %v45_v4  ;;  %v1734_v7 = vld [vmem:[#allocation4 + $0x14] ss:$8 sps:$4 sm:$0xff]   ;;  %228 = vmatprep.subr.bf16.mxu0 %v1731_v5  ;;  %v1736_v8 = vld [vmem:[#allocation4 + $0x10] ss:$8 sps:$4 sm:$0xff]  }
  0x18   :  { %229 = vmatpush1.bf16.msra.mxu0 %v1733_v6  ;;  %v1737_v9 = vld [vmem:[#allocation4 + $0x24] ss:$8 sps:$4 sm:$0xff]   ;;  %v1739_v10 = vld [vmem:[#allocation4 + $0x20] ss:$8 sps:$4 sm:$0xff]   ;;  %v1740_v14 = vld [vmem:[#allocation4 + $0x34] ss:$8 sps:$4 sm:$0xff]  }
  0x19   :  { %230 = vmatprep.subr.bf16.mxu0 %v1734_v7  ;;  %v1742_v24 = vld [vmem:[#allocation4 + $0x30] ss:$8 sps:$4 sm:$0xff]   ;;  %v1743_v27 = vld [vmem:[#allocation4 + $0x44] ss:$8 sps:$4 sm:$0xff]   ;;  %s1862_s22 = smov 96   ;;  %vm221_vm2 = vcmask 130048  }
  0x1a   :  { %v1745_v30 = vld [vmem:[#allocation4 + $0x40] ss:$8 sps:$4 sm:$0xff]   ;;  %v1746_v31 = vld [vmem:[#allocation4 + $0x54] ss:$8 sps:$4 sm:$0xff]   ;;  %v1748_v32 = vld [vmem:[#allocation4 + $0x50] ss:$8 sps:$4 sm:$0xff]  }
  0x1b   :  { %v1749_v33 = vld [vmem:[#allocation4 + $0x64] ss:$8 sps:$4 sm:$0xff]   ;;  %v1751_v34 = vld [vmem:[#allocation4 + $0x60] ss:$8 sps:$4 sm:$0xff]   ;;  %v1752_v35 = vld [vmem:[#allocation4 + $0x74] ss:$8 sps:$4 sm:$0xff]  }
  0x1c   :  { %231 = vmatpush1.bf16.msra.mxu0 %v1736_v8  ;;  %v1754_v36 = vld [vmem:[#allocation4 + $0x70] ss:$8 sps:$4 sm:$0xff]   ;;  %v1755_v37 = vld [vmem:[#allocation4 + $0x84] ss:$8 sps:$4 sm:$0xff]   ;;  %v1757_v38 = vld [vmem:[#allocation4 + $0x80] ss:$8 sps:$4 sm:$0xff]  }
  0x1d   :  { %v60_v11 = vld [vmem:[#allocation2 + $0x1] sm:$0xff]  ;;  %v61_v12 = vld [vmem:[#allocation2 + $0x9] sm:$0xff]  ;;  %232 = vmatprep.subr.bf16.mxu0 %v1737_v9  ;;  %vm104_vm3 = vcmask 785408   ;;  %s1863_s23 = smov 16   ;;  %s1864_s24 = smov 32   ;;  %vm497_vm7 = vcmask 916480  }
  0x1e   :  { %v64_v13 = vld [vmem:[#allocation2 + $0x2] sm:$0xff]  ;;  %v1711_v15 = vpack.i.bf16 %v61_v12, %v60_v11  ;;  %v65_v16 = vld [vmem:[#allocation2 + $0xa] sm:$0xff]  ;;  %v62_v17 = vld [vmem:[#allocation2 + $0x19] sm:$0xff]  ;;  %s1865_s25 = smov 64   ;;  %s1867_s30 = smov 112   ;;  %vm614_vm8 = vcmask 261120  }
  0x1f   :  { %v63_v18 = vld [vmem:[#allocation2 + $0x21] sm:$0xff]  ;;  %v1716_v22 = vpack.i.bf16 %v65_v16, %v64_v13  ;;  %v58_v28 = vld [vmem:[#allocation2 + $0x18] sm:$0xff]  ;;  %s1868_s21 = smov 80   ;;  %vm623_vm9 = vcmask 523264   ;;  %vm628_vm10 = vcmask 654336   ;;  %vm1047_vm11 = vcmask 516096  }
  0x20   :  { %v1721_v19 = vpack.i.bf16 %v63_v18, %v62_v17  ;;  %v66_v20 = vld [vmem:[#allocation2 + $0x1a] sm:$0xff]  ;;  %v67_v21 = vld [vmem:[#allocation2 + $0x22] sm:$0xff]  ;;  %1712 = vrot.lane.b32.xlu0 %v1711_v15, %s1861_s0  ;;  %233 = vmatpush1.bf16.msra.mxu0 %v1739_v10  ;;  %655 = vst [vmem:[#allocation2 + $0x18] sm:$0x1] %v1860_v0  ;;  %vm1869_vm12 = vmmov 0   ;;  %vm1052_vm13 = vcmask 519168  }
  0x21   :  { %v1726_v23 = vpack.i.bf16 %v67_v21, %v66_v20  ;;  %v56_v25 = vld [vmem:[#allocation2] sm:$0xff]  ;;  %v57_v26 = vld [vmem:[#allocation2 + $0x8] sm:$0xff]  ;;  %234 = vmatprep.subr.bf16.mxu0 %v1740_v14  ;;  %vm1317_vm14 = vcmask 253952   ;;  %vm1308_vm15 = vcmask 257024   ;;  %vm1322_vm0 = vcmask 254976  }
  0x22   :  { %1722 = vrot.lane.b32.xlu1 %v1721_v19, %s1861_s0  ;;  %656 = vst [vmem:[#allocation2 + $0x9] sm:$0x1] %v1860_v0  ;;  %654 = vst [vmem:[#allocation2] sm:$0x1] %v1860_v0  ;;  %v59_v29 = vld [vmem:[#allocation2 + $0x20] sm:$0xff] }
  0x23   :  { %657 = vst [vmem:[#allocation2 + $0x21] sm:$0x1] %v1860_v0 }
  0x24   :  { %1717 = vrot.lane.b32.xlu0 %v1716_v22, %s1862_s22  ;;  %235 = vmatpush1.bf16.msra.mxu0 %v1742_v24 }
  0x25   :  { %236 = vmatprep.subr.bf16.mxu0 %v1743_v27 }
  0x26   :  { %1727 = vrot.lane.b32.xlu1 %v1726_v23, %s1862_s22 }
  0x28   :  { %237 = vmatpush1.bf16.msra.mxu0 %v1745_v30 }
  0x29   :  { %238 = vmatprep.subr.bf16.mxu0 %v1746_v31 }
  0x2c   :  { %239 = vmatpush1.bf16.msra.mxu0 %v1748_v32 }
  0x2d   :  { %240 = vmatprep.subr.bf16.mxu0 %v1749_v33 }
  0x30   :  { %241 = vmatpush1.bf16.msra.mxu0 %v1751_v34 }
  0x31   :  { %242 = vmatprep.subr.bf16.mxu0 %v1752_v35 }
  0x34   :  { %243 = vmatpush1.bf16.msra.mxu0 %v1754_v36 }
  0x35   :  { %244 = vmatprep.subr.bf16.mxu0 %v1755_v37 }
  0x38   :  { %245 = vmatpush1.bf16.msra.mxu0 %v1757_v38 }
  0x92   :  { %v1713_v39 = vpop.permute.xlu0 %1712 }
  0x93   :  { %v1715_v41 = vunpack.i.h.bf16 %v1713_v39  ;;  %v1714_v42 = vunpack.i.l.bf16 %v1713_v39 }
  0x94   :  { %v1723_v40 = vpop.permute.xlu1 %1722 }
  0x95   :  { %v1725_v46 = vunpack.i.h.bf16 %v1723_v40  ;;  %v1724_v47 = vunpack.i.l.bf16 %v1723_v40  ;;  %v100_v49 = vsel %vm51_vm1, %v56_v25, %v1714_v42  ;;  %v101_v50 = vsel %vm51_vm1, %v57_v26, %v1715_v41 }
  0x96   :  { %v1718_v43 = vpop.permute.xlu0 %1717 }
  0x97   :  { %v1720_v44 = vunpack.i.h.bf16 %v1718_v43  ;;  %v1719_v45 = vunpack.i.l.bf16 %v1718_v43  ;;  %v102_v58 = vsel %vm51_vm1, %v58_v28, %v1724_v47  ;;  %v103_v59 = vsel %vm51_vm1, %v59_v29, %v1725_v46 }
  0x98   :  { %v1728_v48 = vpop.permute.xlu1 %1727 }
  0x99   :  { %v1730_v51 = vunpack.i.h.bf16 %v1728_v48  ;;  %v1729_v52 = vunpack.i.l.bf16 %v1728_v48  ;;  %v110_v53 = vpack.c.bf16 %v1720_v44, %v1719_v45  ;;  %v105_v54 = vsel %vm104_vm3, %v100_v49, %v1719_v45 }
  0x9a   :  { %v106_v55 = vsel %vm104_vm3, %v101_v50, %v1720_v44 }
  0x9b   :  { %v112_v56 = vpack.c.bf16 %v1730_v51, %v1729_v52  ;;  %v109_v57 = vpack.c.bf16 %v106_v55, %v105_v54  ;;  %1572 = vmatprep.mubr.msk.bf16.mxu0 %vm221_vm2, %v110_v53  ;;  %v107_v60 = vsel %vm104_vm3, %v102_v58, %v1729_v52  ;;  %v108_v61 = vsel %vm104_vm3, %v103_v59, %v1730_v51 }
  0x9c   :  { %v111_v62 = vpack.c.bf16 %v108_v61, %v107_v60  ;;  %v303_v52 = vlaneseq }
  0x9d   :  { %261 = vmatmul.mubr.bf16.vlgmr.msra.gmra.mrb[0].mxu0 %v109_v57 }
  0x9e   :  { %1573 = vmatprep.mubr.msk.bf16.mxu0 %vm221_vm2, %v112_v56  ;;  %v304_v53 = vand.u32 127, %v303_v52 }
  0xa0   :  { %vm305_vm4 = vcmp.lt.s32.totalorder %v304_v53, 16  ;;  %vm314_vm5 = vcmp.lt.s32.totalorder %v304_v53, 32  ;;  %vm323_vm6 = vcmp.lt.s32.totalorder %v304_v53, 64 }
  0xa5   :  { %271 = vmatmul.mubr.bf16.gmra.mrb[4].mxu0 %v111_v62 }
 0x170   :  { %v1964_v63 = vpop.f32.mrb[0].mxu0 }
 0x171   :  { %v1966_v1 = vpop.f32.mrb[1].mxu0  ;;  %v329_v3 = vmul.f32 %v1964_v63, %v1964_v63 }
 0x172   :  { %v1968_v2 = vpop.f32.mrb[2].mxu0  ;;  %v330_v7 = vmul.f32 %v1966_v1, %v1966_v1 }
 0x173   :  { %v281_v4 = vadd.f32 %v1968_v2, %v1964_v63  ;;  %v331_v5 = vmul.f32 %v1968_v2, %v1968_v2  ;;  %v1976_v6 = vpop.f32.mrb[3].mxu0 }
 0x174   :  { %v290_v8 = vadd.f32 %v1976_v6, %v1966_v1  ;;  %v332_v9 = vmul.f32 %v1976_v6, %v1976_v6 }
 0x175   :  { %v337_v10 = vadd.f32 %v331_v5, %v329_v3 }
 0x176   :  { %v346_v11 = vadd.f32 %v332_v9, %v330_v7 }
 0x178   :  { %v1984_v12 = vpop.f32.mrb[4].mxu0 }
 0x179   :  { %v282_v13 = vadd.f32 %v281_v4, %v1984_v12  ;;  %v333_v14 = vmul.f32 %v1984_v12, %v1984_v12  ;;  %v1989_v15 = vpop.f32.mrb[5].mxu0 }
 0x17a   :  { %v291_v16 = vadd.f32 %v290_v8, %v1989_v15  ;;  %v334_v17 = vmul.f32 %v1989_v15, %v1989_v15  ;;  %v1994_v18 = vpop.f32.mrb[6].mxu0 }
 0x17b   :  { %v338_v19 = vadd.f32 %v337_v10, %v333_v14  ;;  %v283_v20 = vadd.f32 %v282_v13, %v1994_v18  ;;  %v335_v21 = vmul.f32 %v1994_v18, %v1994_v18  ;;  %v1999_v22 = vpop.f32.mrb[7].mxu0 }
 0x17c   :  { %v347_v23 = vadd.f32 %v346_v11, %v334_v17  ;;  %v292_v24 = vadd.f32 %v291_v16, %v1999_v22  ;;  %v336_v25 = vmul.f32 %v1999_v22, %v1999_v22 }
 0x17d   :  { %v284_v26 = vrot.slane %v283_v20, 4  ;;  %v339_v27 = vadd.f32 %v338_v19, %v335_v21 }
 0x17e   :  { %v293_v28 = vrot.slane %v292_v24, 4  ;;  %v348_v29 = vadd.f32 %v347_v23, %v336_v25 }
 0x17f   :  { %v285_v30 = vadd.f32 %v284_v26, %v283_v20  ;;  %v340_v31 = vrot.slane %v339_v27, 4 }
 0x180   :  { %v294_v32 = vadd.f32 %v293_v28, %v292_v24  ;;  %v349_v33 = vrot.slane %v348_v29, 4 }
 0x181   :  { %v286_v34 = vrot.slane %v285_v30, 2  ;;  %v341_v35 = vadd.f32 %v340_v31, %v339_v27 }
 0x182   :  { %v295_v36 = vrot.slane %v294_v32, 2  ;;  %v350_v37 = vadd.f32 %v349_v33, %v348_v29 }
 0x183   :  { %v287_v38 = vadd.f32 %v286_v34, %v285_v30  ;;  %v342_v39 = vrot.slane %v341_v35, 2 }
 0x184   :  { %v296_v40 = vadd.f32 %v295_v36, %v294_v32  ;;  %v351_v41 = vrot.slane %v350_v37, 2 }
 0x185   :  { %v288_v42 = vrot.slane %v287_v38, 1  ;;  %v343_v43 = vadd.f32 %v342_v39, %v341_v35 }
 0x186   :  { %v297_v44 = vrot.slane %v296_v40, 1  ;;  %v352_v45 = vadd.f32 %v351_v41, %v350_v37 }
 0x187   :  { %v289_v46 = vadd.f32 %v288_v42, %v287_v38  ;;  %v344_v47 = vrot.slane %v343_v43, 1  ;;  %v1866_v42 = vmov 1966171168  }
 0x188   :  { %v298_v48 = vadd.f32 %v297_v44, %v296_v40  ;;  %v353_v49 = vrot.slane %v352_v45, 1  ;;  %v2016_v44 = vshrl.u32 %v303_v52, 7 }
 0x189   :  { %299 = vrot.lane.b32.xlu0 %v289_v46, %s1863_s23  ;;  %v345_v50 = vadd.f32 %v344_v47, %v343_v43  ;;  %v391_v43 = vunpack.c.l.s4 %v1866_v42 }
 0x18a   :  { %301 = vrot.lane.b32.xlu1 %v298_v48, %s1863_s23  ;;  %v354_v51 = vadd.f32 %v353_v49, %v352_v45 }
 0x18b   :  { %v392_v45 = vunpack.c.0.s8 %v391_v43 }
 0x18d   :  { %355 = vrot.lane.b32.xlu0 %v345_v50, %s1863_s23 }
 0x18e   :  { %357 = vrot.lane.b32.xlu1 %v354_v51, %s1863_s23 }
 0x1fb   :  { %v300_v54 = vpop.permute.xlu0 %299 }
 0x1fc   :  { %v302_v55 = vpop.permute.xlu1 %301 }
 0x1fd   :  { %v306_v56 = vsel %vm305_vm4, %v300_v54, %v302_v55  ;;  %v307_v57 = vsel %vm305_vm4, %v302_v55, %v300_v54  ;;  %v413_v54 = vsub.s32 1, %v2016_v44 }
 0x1fe   :  { %v308_v58 = vadd.f32 %v307_v57, %v289_v46  ;;  %v309_v59 = vadd.f32 %v306_v56, %v298_v48  ;;  %v395_v46 = vsub.s32 %v392_v45, %v2016_v44 }
 0x1ff   :  { %v356_v60 = vpop.permute.xlu0 %355 }
 0x200   :  { %310 = vrot.lane.b32.xlu0 %v308_v58, %s1864_s24  ;;  %312 = vrot.lane.b32.xlu1 %v309_v59, %s1864_s24  ;;  %v358_v61 = vpop.permute.xlu1 %357 }
 0x201   :  { %v359_v62 = vsel %vm305_vm4, %v356_v60, %v358_v61  ;;  %v360_v3 = vsel %vm305_vm4, %v358_v61, %v356_v60  ;;  %v385_v61 = vld [vmem:[%s2398_s6] ss:$4 sm:$0x3] }
 0x202   :  { %v361_v4 = vadd.f32 %v360_v3, %v345_v50  ;;  %v362_v5 = vadd.f32 %v359_v62, %v354_v51  ;;  %v384_v50 = vld [vmem:[%s2397_s5] ss:$4 sm:$0x3]  ;;  %v2023_v51 = vsub.s32 0, %v2016_v44 }
 0x204   :  { %363 = vrot.lane.b32.xlu0 %v361_v4, %s1864_s24  ;;  %365 = vrot.lane.b32.xlu1 %v362_v5, %s1864_s24 }
 0x272   :  { %v311_v7 = vpop.permute.xlu0 %310  ;;  %v313_v8 = vpop.permute.xlu1 %312 }
 0x273   :  { %v315_v9 = vsel %vm314_vm5, %v311_v7, %v313_v8  ;;  %v316_v10 = vsel %vm314_vm5, %v313_v8, %v311_v7 }
 0x274   :  { %v317_v11 = vadd.f32 %v316_v10, %v308_v58  ;;  %v318_v13 = vadd.f32 %v315_v9, %v309_v59 }
 0x276   :  { %v364_v14 = vpop.permute.xlu0 %363  ;;  %319 = vrot.lane.b32.xlu0 %v317_v11, %s1865_s25  ;;  %321 = vrot.lane.b32.xlu1 %v318_v13, %s1865_s25  ;;  %v366_v16 = vpop.permute.xlu1 %365 }
 0x277   :  { %v367_v17 = vsel %vm314_vm5, %v364_v14, %v366_v16  ;;  %v368_v19 = vsel %vm314_vm5, %v366_v16, %v364_v14 }
 0x278   :  { %v369_v20 = vadd.f32 %v368_v19, %v361_v4  ;;  %v370_v21 = vadd.f32 %v367_v17, %v362_v5 }
 0x27a   :  { %371 = vrot.lane.b32.xlu0 %v369_v20, %s1865_s25  ;;  %373 = vrot.lane.b32.xlu1 %v370_v21, %s1865_s25 }
 0x2e8   :  { %v320_v23 = vpop.permute.xlu0 %319  ;;  %v322_v24 = vpop.permute.xlu1 %321 }
 0x2e9   :  { %v324_v25 = vsel %vm323_vm6, %v320_v23, %v322_v24  ;;  %v325_v26 = vsel %vm323_vm6, %v322_v24, %v320_v23 }
 0x2ea   :  { %v326_v27 = vadd.f32 %v325_v26, %v317_v11  ;;  %v327_v28 = vadd.f32 %v324_v25, %v318_v13 }
 0x2ec   :  { %v328_v29 = vadd.f32 %v327_v28, %v326_v27  ;;  %v372_v30 = vpop.permute.xlu0 %371  ;;  %v374_v31 = vpop.permute.xlu1 %373 }
 0x2ed   :  { %v375_v32 = vsel %vm323_vm6, %v372_v30, %v374_v31  ;;  %v376_v33 = vsel %vm323_vm6, %v374_v31, %v372_v30 }
 0x2ee   :  { %v380_v34 = vmul.f32 0.001953125, %v328_v29  ;;  %v377_v35 = vadd.f32 %v376_v33, %v369_v20  ;;  %v378_v36 = vadd.f32 %v375_v32, %v370_v21 }
 0x2f0   :  { %v379_v37 = vadd.f32 %v378_v36, %v377_v35  ;;  %v382_v38 = vmul.f32 %v380_v34, %v380_v34 }
 0x2f2   :  { %v381_v39 = vmul.f32 0.001953125, %v379_v37 }
 0x2f4   :  { %v383_v40 = vsub.f32 %v381_v39, %v382_v38 }
 0x2f6   :  { %v386_v41 = vadd.f32 1e-05, %v383_v40 }
 0x2f8   :  { %1801 = vrsqrt.f32 %v386_v41 }
 0x302   :  { %v1802_v47 = vpop.eup %1801 }
 0x303   :  { %v389_v48 = vcombine.low %v1802_v47, %v1802_v47  ;;  %v1758_v47 = vld [vmem:[%s2394_s2 + $0x40] sm:$0xff]  }
 0x304   :  { %1620 = vmatprep.subr.bf16.mxu1 %v1758_v47 }
 0x305   :  { %v396_v49 = vrot.slane %v389_v48, %v395_v46  ;;  %v1759_v48 = vld [vmem:[%s2394_s2] sm:$0xff]  }
 0x306   :  { %1621 = vmatpush3.bf16.msra.mxu1 %v1759_v48 }
 0x307   :  { %v403_v53 = vrot.slane %v396_v49, %v395_v46 }
 0x309   :  { %v405_v55 = vmul.f32 %v403_v53, %v384_v50  ;;  %v1760_v50 = vld [vmem:[%s2394_s2 + $0x48] sm:$0xff]  }
 0x30a   :  { %v1761_v53 = vld [vmem:[%s2394_s2 + $0x8] sm:$0xff]   ;;  %1622 = vmatprep.subr.bf16.mxu1 %v1760_v50 }
 0x30b   :  { %v410_v52 = vrot.slane %v405_v55, %v2023_v51  ;;  %v414_v56 = vrot.slane %v405_v55, %v413_v54  ;;  %1623 = vmatpush3.bf16.msra.mxu1 %v1761_v53  ;;  %v1763_v55 = vld [vmem:[%s2394_s2 + $0x10] sm:$0xff]  }
 0x30d   :  { %v417_v57 = vmul.f32 %v410_v52, %v380_v34  ;;  %v418_v58 = vmul.f32 %v414_v56, %v380_v34  ;;  %v439_v4 = vmul.f32 %v414_v56, %v1966_v1  ;;  %v438_v7 = vmul.f32 %v410_v52, %v1964_v63 }
 0x30e   :  { %v441_v11 = vmul.f32 %v414_v56, %v1976_v6  ;;  %v440_v13 = vmul.f32 %v410_v52, %v1968_v2  ;;  %v443_v1 = vmul.f32 %v414_v56, %v1989_v15  ;;  %v442_v63 = vmul.f32 %v410_v52, %v1984_v12 }
 0x30f   :  { %v421_v59 = vcombine.low %v417_v57, %v418_v58  ;;  %v445_v2 = vmul.f32 %v414_v56, %v1999_v22  ;;  %v444_v6 = vmul.f32 %v410_v52, %v1994_v18  ;;  %v1764_v52 = vld [vmem:[%s2394_s2 + $0x58] sm:$0xff]   ;;  %v1766_v57 = vld [vmem:[%s2394_s2 + $0x60] sm:$0xff]  }
 0x310   :  { %v1765_v56 = vld [vmem:[%s2394_s2 + $0x18] sm:$0xff]   ;;  %v1767_v58 = vld [vmem:[%s2394_s2 + $0x20] sm:$0xff]  }
 0x311   :  { %v428_v60 = vrot.slane %v421_v59, %v395_v46  ;;  %v1768_v59 = vld [vmem:[%s2394_s2 + $0x68] sm:$0xff]  }
 0x313   :  { %v435_v62 = vrot.slane %v428_v60, %v395_v46  ;;  %v1769_v60 = vld [vmem:[%s2394_s2 + $0x28] sm:$0xff]  }
 0x315   :  { %v437_v3 = vsub.f32 %v385_v61, %v435_v62  ;;  %v1770_v61 = vld [vmem:[%s2394_s2 + $0x70] sm:$0xff]  }
 0x316   :  { %v1771_v62 = vld [vmem:[%s2394_s2 + $0x30] sm:$0xff]  }
 0x317   :  { %v454_v5 = vrot.slane %v437_v3, %v413_v54  ;;  %v450_v8 = vrot.slane %v437_v3, %v2023_v51  ;;  %v1762_v54 = vld [vmem:[%s2394_s2 + $0x50] sm:$0xff]   ;;  %v1772_v3 = vld [vmem:[%s2394_s2 + $0x78] sm:$0xff]  }
 0x318   :  { %1624 = vmatprep.subr.bf16.mxu1 %v1762_v54 }
 0x319   :  { %v458_v9 = vadd.f32 %v454_v5, %v439_v4  ;;  %v457_v10 = vadd.f32 %v450_v8, %v438_v7  ;;  %v460_v17 = vadd.f32 %v454_v5, %v441_v11  ;;  %v459_v19 = vadd.f32 %v450_v8, %v440_v13  ;;  %1625 = vmatpush3.bf16.msra.mxu1 %v1763_v55  ;;  %v1773_v4 = vld [vmem:[%s2394_s2 + $0x38] sm:$0xff]  }
 0x31a   :  { %v462_v23 = vadd.f32 %v454_v5, %v443_v1  ;;  %v461_v24 = vadd.f32 %v450_v8, %v442_v63  ;;  %v464_v27 = vadd.f32 %v454_v5, %v445_v2  ;;  %v463_v28 = vadd.f32 %v450_v8, %v444_v6  ;;  %1626 = vmatprep.subr.bf16.mxu1 %v1764_v52 }
 0x31b   :  { %v466_v14 = vmax.f32 %v458_v9, 0.0  ;;  %v465_v16 = vmax.f32 %v457_v10, 0.0  ;;  %v468_v20 = vmax.f32 %v460_v17, 0.0  ;;  %v467_v21 = vmax.f32 %v459_v19, 0.0 }
 0x31c   :  { %v470_v25 = vmax.f32 %v462_v23, 0.0  ;;  %v469_v26 = vmax.f32 %v461_v24, 0.0  ;;  %v472_v12 = vmax.f32 %v464_v27, 0.0  ;;  %v471_v15 = vmax.f32 %v463_v28, 0.0 }
 0x31d   :  { %483 = vrot.lane.b32.xlu1 %v466_v14, %s1867_s30  ;;  %481 = vrot.lane.b32.xlu0 %v465_v16, %s1867_s30 }
 0x31e   :  { %1627 = vmatpush3.bf16.msra.mxu1 %v1765_v56 }
 0x31f   :  { %1628 = vmatprep.subr.bf16.mxu1 %v1766_v57 }
 0x321   :  { %487 = vrot.lane.b32.xlu1 %v468_v20, %s1867_s30  ;;  %485 = vrot.lane.b32.xlu0 %v467_v21, %s1867_s30 }
 0x322   :  { %1629 = vmatpush3.bf16.msra.mxu1 %v1767_v58 }
 0x323   :  { %1630 = vmatprep.subr.bf16.mxu1 %v1768_v59 }
 0x325   :  { %491 = vrot.lane.b32.xlu1 %v470_v25, %s1867_s30  ;;  %489 = vrot.lane.b32.xlu0 %v469_v26, %s1867_s30 }
 0x326   :  { %1631 = vmatpush3.bf16.msra.mxu1 %v1769_v60 }
 0x327   :  { %1632 = vmatprep.subr.bf16.mxu1 %v1770_v61 }
 0x329   :  { %495 = vrot.lane.b32.xlu1 %v472_v12, %s1867_s30  ;;  %493 = vrot.lane.b32.xlu0 %v471_v15, %s1867_s30 }
 0x32a   :  { %1633 = vmatpush3.bf16.msra.mxu1 %v1771_v62 }
 0x32b   :  { %1634 = vmatprep.subr.bf16.mxu1 %v1772_v3 }
 0x32e   :  { %1635 = vmatpush3.bf16.msra.mxu1 %v1773_v4 }
 0x32f   :  { %1658 = vmatprep.subr.bf16.mxu1 %v1860_v0 }
 0x38f   :  { %v484_v29 = vpop.permute.xlu1 %483  ;;  %v482_v35 = vpop.permute.xlu0 %481 }
 0x390   :  { %v511_v30 = vmax.f32 %v466_v14, %v484_v29  ;;  %v498_v38 = vsel %vm497_vm7, %v482_v35, %v484_v29 }
 0x391   :  { %v2066_v39 = vmax.f32 %v465_v16, %v498_v38 }
 0x392   :  { %562 = vrot.lane.b32.xlu0 %v511_v30, %s1865_s25 }
 0x393   :  { %v488_v22 = vpop.permute.xlu1 %487  ;;  %v486_v36 = vpop.permute.xlu0 %485 }
 0x394   :  { %v513_v18 = vmax.f32 %v468_v20, %v488_v22  ;;  %v499_v40 = vsel %vm497_vm7, %v486_v36, %v488_v22 }
 0x395   :  { %v2073_v43 = vmax.f32 %v467_v21, %v499_v40 }
 0x396   :  { %564 = vrot.lane.b32.xlu1 %v513_v18, %s1865_s25 }
 0x397   :  { %v492_v31 = vpop.permute.xlu1 %491  ;;  %v490_v37 = vpop.permute.xlu0 %489 }
 0x398   :  { %v515_v32 = vmax.f32 %v470_v25, %v492_v31  ;;  %v500_v41 = vsel %vm497_vm7, %v490_v37, %v492_v31 }
 0x399   :  { %v2075_v45 = vmax.f32 %v469_v26, %v500_v41 }
 0x39a   :  { %566 = vrot.lane.b32.xlu0 %v515_v32, %s1865_s25 }
 0x39b   :  { %v496_v33 = vpop.permute.xlu1 %495  ;;  %v494_v42 = vpop.permute.xlu0 %493 }
 0x39c   :  { %v2050_v34 = vmax.f32 %v472_v12, %v496_v33  ;;  %v501_v46 = vsel %vm497_vm7, %v494_v42, %v496_v33 }
 0x39d   :  { %v2088_v49 = vmax.f32 %v471_v15, %v501_v46 }
 0x39e   :  { %568 = vrot.lane.b32.xlu1 %v2050_v34, %s1865_s25  ;;  %574 = vrot.lane.b32.xlu0 %v511_v30, %s1861_s0 }
 0x3a2   :  { %576 = vrot.lane.b32.xlu1 %v513_v18, %s1861_s0  ;;  %578 = vrot.lane.b32.xlu0 %v515_v32, %s1861_s0 }
 0x3a6   :  { %580 = vrot.lane.b32.xlu1 %v2050_v34, %s1861_s0  ;;  %586 = vrot.lane.b32.xlu0 %v511_v30, %s1864_s24 }
 0x3aa   :  { %588 = vrot.lane.b32.xlu1 %v513_v18, %s1864_s24  ;;  %590 = vrot.lane.b32.xlu0 %v515_v32, %s1864_s24 }
 0x3ae   :  { %592 = vrot.lane.b32.xlu1 %v2050_v34, %s1864_s24  ;;  %598 = vrot.lane.b32.xlu0 %v511_v30, %s1863_s23 }
 0x3b2   :  { %600 = vrot.lane.b32.xlu1 %v513_v18, %s1863_s23  ;;  %522 = vrot.lane.b32.xlu0 %v2066_v39, %s1867_s30 }
 0x3b6   :  { %524 = vrot.lane.b32.xlu1 %v2073_v43, %s1867_s30  ;;  %526 = vrot.lane.b32.xlu0 %v2075_v45, %s1867_s30 }
 0x3ba   :  { %534 = vrot.lane.b32.xlu0 %v2066_v39, %s1862_s22  ;;  %528 = vrot.lane.b32.xlu1 %v2088_v49, %s1867_s30 }
 0x3be   :  { %538 = vrot.lane.b32.xlu0 %v2075_v45, %s1862_s22  ;;  %536 = vrot.lane.b32.xlu1 %v2073_v43, %s1862_s22 }
 0x3c2   :  { %546 = vrot.lane.b32.xlu0 %v2066_v39, %s1868_s21  ;;  %540 = vrot.lane.b32.xlu1 %v2088_v49, %s1862_s22 }
 0x3c6   :  { %550 = vrot.lane.b32.xlu0 %v2075_v45, %s1868_s21  ;;  %548 = vrot.lane.b32.xlu1 %v2073_v43, %s1868_s21 }
 0x3ca   :  { %602 = vrot.lane.b32.xlu0 %v515_v32, %s1863_s23  ;;  %552 = vrot.lane.b32.xlu1 %v2088_v49, %s1868_s21 }
 0x3ce   :  { %604 = vrot.lane.b32.xlu1 %v2050_v34, %s1863_s23 }
 0x404   :  { %v563_v5 = vpop.permute.xlu0 %562 }
 0x408   :  { %v565_v7 = vpop.permute.xlu1 %564 }
 0x40c   :  { %v567_v8 = vpop.permute.xlu0 %566 }
 0x410   :  { %v569_v9 = vpop.permute.xlu1 %568  ;;  %v575_v10 = vpop.permute.xlu0 %574 }
 0x414   :  { %v577_v11 = vpop.permute.xlu1 %576  ;;  %v579_v13 = vpop.permute.xlu0 %578 }
 0x418   :  { %v581_v14 = vpop.permute.xlu1 %580  ;;  %v587_v16 = vpop.permute.xlu0 %586 }
 0x41c   :  { %v589_v17 = vpop.permute.xlu1 %588  ;;  %v591_v19 = vpop.permute.xlu0 %590 }
 0x420   :  { %v593_v1 = vpop.permute.xlu1 %592  ;;  %v599_v63 = vpop.permute.xlu0 %598 }
 0x424   :  { %v601_v20 = vpop.permute.xlu1 %600  ;;  %v523_v21 = vpop.permute.xlu0 %522 }
 0x425   :  { %v610_v27 = vsel %vm221_vm2, %v2066_v39, %v523_v21  ;;  %v1781_v21 = vld [vmem:[%s2394_s2 + $0xb8] sm:$0xff]  }
 0x428   :  { %v525_v23 = vpop.permute.xlu1 %524  ;;  %v527_v24 = vpop.permute.xlu0 %526 }
 0x429   :  { %v611_v22 = vsel %vm221_vm2, %v2073_v43, %v525_v23  ;;  %v612_v18 = vsel %vm221_vm2, %v2075_v45, %v527_v24 }
 0x42c   :  { %v529_v2 = vpop.permute.xlu1 %528  ;;  %v535_v6 = vpop.permute.xlu0 %534 }
 0x42d   :  { %v615_v28 = vsel %vm614_vm8, %v610_v27, %v535_v6  ;;  %v613_v42 = vsel %vm221_vm2, %v2088_v49, %v529_v2 }
 0x430   :  { %v537_v25 = vpop.permute.xlu1 %536  ;;  %v539_v26 = vpop.permute.xlu0 %538 }
 0x431   :  { %v616_v32 = vsel %vm614_vm8, %v611_v22, %v537_v25  ;;  %v617_v33 = vsel %vm614_vm8, %v612_v18, %v539_v26 }
 0x434   :  { %v541_v12 = vpop.permute.xlu1 %540  ;;  %v547_v15 = vpop.permute.xlu0 %546 }
 0x435   :  { %v619_v29 = vsel %vm51_vm1, %v615_v28, %v547_v15  ;;  %v618_v46 = vsel %vm614_vm8, %v613_v42, %v541_v12 }
 0x436   :  { %v624_v30 = vsel %vm623_vm9, %v619_v29, %v563_v5 }
 0x437   :  { %v629_v31 = vsel %vm628_vm10, %v624_v30, %v575_v10 }
 0x438   :  { %v633_v34 = vsel %vm104_vm3, %v629_v31, %v587_v16  ;;  %v549_v35 = vpop.permute.xlu1 %548  ;;  %v551_v36 = vpop.permute.xlu0 %550  ;;  %v1775_v16 = vld [vmem:[%s2394_s2 + $0x88] sm:$0xff]  }
 0x439   :  { %v637_v37 = vsel %vm497_vm7, %v633_v34, %v599_v63  ;;  %v620_v38 = vsel %vm51_vm1, %v616_v32, %v549_v35  ;;  %v621_v39 = vsel %vm51_vm1, %v617_v33, %v551_v36  ;;  %v1779_v63 = vld [vmem:[%s2394_s2 + $0xa8] sm:$0xff]  }
 0x43a   :  { %641 = vst [vmem:[#allocation3] sm:$0xff] %v637_v37  ;;  %v625_v40 = vsel %vm623_vm9, %v620_v38, %v565_v7  ;;  %v626_v41 = vsel %vm623_vm9, %v621_v39, %v567_v8 }
 0x43b   :  { %v630_v43 = vsel %vm628_vm10, %v625_v40, %v577_v11  ;;  %v631_v45 = vsel %vm628_vm10, %v626_v41, %v579_v13  ;;  %v1774_v11 = vld [vmem:[%s2394_s2 + $0x80] sm:$0xff]  }
 0x43c   :  { %v634_v47 = vsel %vm104_vm3, %v630_v43, %v589_v17  ;;  %v553_v48 = vpop.permute.xlu1 %552  ;;  %v635_v50 = vsel %vm104_vm3, %v631_v45, %v591_v19  ;;  %v603_v53 = vpop.permute.xlu0 %602  ;;  %v1776_v17 = vld [vmem:[%s2394_s2 + $0x90] sm:$0xff]   ;;  %v1777_v19 = vld [vmem:[%s2394_s2 + $0x98] sm:$0xff]  }
 0x43d   :  { %v638_v54 = vsel %vm497_vm7, %v634_v47, %v601_v20  ;;  %v622_v55 = vsel %vm51_vm1, %v618_v46, %v553_v48  ;;  %v639_v52 = vsel %vm497_vm7, %v635_v50, %v603_v53  ;;  %v1780_v20 = vld [vmem:[%s2394_s2 + $0xb0] sm:$0xff]  }
 0x43e   :  { %642 = vst [vmem:[#allocation3 + $0x8] sm:$0xff] %v638_v54  ;;  %v627_v49 = vsel %vm623_vm9, %v622_v55, %v569_v9  ;;  %643 = vst [vmem:[#allocation3 + $0x10] sm:$0xff] %v639_v52 }
 0x43f   :  { %v632_v56 = vsel %vm628_vm10, %v627_v49, %v581_v14 }
 0x440   :  { %v636_v57 = vsel %vm104_vm3, %v632_v56, %v593_v1  ;;  %v605_v58 = vpop.permute.xlu1 %604  ;;  %v1778_v1 = vld [vmem:[%s2394_s2 + $0xa0] sm:$0xff]  }
 0x441   :  { %v640_v59 = vsel %vm497_vm7, %v636_v57, %v605_v58 }
 0x442   :  { %644 = vst [vmem:[#allocation3 + $0x18] sm:$0xff] %v640_v59 }
 0x445   :  { %v645_v60 = vld [vmem:[#allocation3] ss:$2 sm:$0xff]  ;;  %v649_v61 = vld [vmem:[#allocation3 + $0x1] ss:$2 sm:$0xff] }
 0x446   :  { %v652_v62 = vmax.f32 %v645_v60, %v649_v61 }
 0x448   :  { %658 = vst [vmem:[#allocation2 + $0x1] sm:$0xff] %v652_v62 }
 0x449   :  { %v647_v3 = vld [vmem:[#allocation3 + $0x10] ss:$2 sm:$0xff]  ;;  %v651_v4 = vld [vmem:[#allocation3 + $0x11] ss:$2 sm:$0xff] }
 0x44a   :  { %v653_v5 = vmax.f32 %v647_v3, %v651_v4 }
 0x44c   :  { %659 = vst [vmem:[#allocation2 + $0x19] sm:$0xff] %v653_v5  ;;  %v667_v7 = vpack.c.bf16 %v653_v5, %v652_v62  ;;  %v981_v5 = vld [vmem:[%s2397_s5 + $0x1] sm:$0x1] }
 0x44e   :  { %893 = vmatprep.mubr.bf16.mxu1 %v667_v7 }
 0x44f   :  { %v660_v8 = vld [vmem:[#allocation2] sm:$0xff] }
 0x450   :  { %v664_v9 = vld [vmem:[#allocation2 + $0x2] sm:$0xff]  ;;  %1048 = vst.msk [vmem:[#allocation2] sm:$0x1] %vm1047_vm11, %v1860_v0 }
 0x451   :  { %1050 = vst.msk [vmem:[#allocation2 + $0x5] sm:$0x1] %vm1047_vm11, %v1860_v0 }
 0x453   :  { %v661_v10 = vld [vmem:[#allocation2 + $0x18] sm:$0xff] }
 0x454   :  { %v665_v13 = vld [vmem:[#allocation2 + $0x1a] sm:$0xff]  ;;  %v666_v14 = vpack.c.bf16 %v661_v10, %v660_v8  ;;  %1049 = vst.msk [vmem:[#allocation2 + $0x18] sm:$0x1] %vm1047_vm11, %v1860_v0 }
 0x455   :  { %1051 = vst.msk [vmem:[#allocation2 + $0x1d] sm:$0x1] %vm1047_vm11, %v1860_v0  ;;  %v668_v23 = vpack.c.bf16 %v665_v13, %v664_v9  ;;  %v982_v9 = vld [vmem:[%s2398_s6 + $0x1] sm:$0x1] }
 0x456   :  { %894 = vmatmul.mubr.bf16.vlgmr.msra.gmra.mrb[0].mxu1 %v666_v14 }
 0x457   :  { %1659 = vmatpush3.bf16.msra.mxu1 %v1774_v11  ;;  %1674 = vmatprep.mubr.msk.bf16.mxu1 %vm1869_vm12, %v1860_v0 }
 0x458   :  { %1660 = vmatprep.subr.bf16.mxu1 %v1860_v0 }
 0x45b   :  { %1661 = vmatpush3.bf16.msra.mxu1 %v1775_v16 }
 0x45c   :  { %1662 = vmatprep.subr.bf16.mxu1 %v1860_v0 }
 0x45f   :  { %1663 = vmatpush3.bf16.msra.mxu1 %v1776_v17 }
 0x460   :  { %1664 = vmatprep.subr.bf16.mxu1 %v1860_v0 }
 0x463   :  { %1665 = vmatpush3.bf16.msra.mxu1 %v1777_v19 }
 0x464   :  { %1666 = vmatprep.subr.bf16.mxu1 %v1860_v0 }
 0x467   :  { %1667 = vmatpush3.bf16.msra.mxu1 %v1778_v1 }
 0x468   :  { %1668 = vmatprep.subr.bf16.mxu1 %v1860_v0 }
 0x46b   :  { %1669 = vmatpush3.bf16.msra.mxu1 %v1779_v63 }
 0x46c   :  { %1670 = vmatprep.subr.bf16.mxu1 %v1860_v0 }
 0x46f   :  { %1671 = vmatpush3.bf16.msra.mxu1 %v1780_v20 }
 0x470   :  { %1672 = vmatprep.subr.bf16.mxu1 %v1860_v0 }
 0x473   :  { %1673 = vmatpush3.bf16.msra.mxu1 %v1781_v21 }
 0x474   :  { %1678 = vmatprep.subr.bf16.mxu1 %v1860_v0 }
 0x476   :  { %1675 = vmatmul.mubr.bf16.vlgmr.msra.gmra.mrb[4].mxu1 %v668_v23 }
 0x477   :  { %1690 = vmatprep.mubr.msk.bf16.mxu1 %vm1869_vm12, %v1860_v0 }
 0x529   :  { %v1636_v24 = vpop.f32.mrb[0].mxu1 }
 0x52a   :  { %v1637_v2 = vpop.f32.mrb[1].mxu1 }
 0x52b   :  { %v1638_v6 = vadd.f32 %v1637_v2, %v1636_v24  ;;  %v1639_v25 = vpop.f32.mrb[2].mxu1 }
 0x52c   :  { %v1640_v26 = vpop.f32.mrb[3].mxu1 }
 0x52d   :  { %v1641_v27 = vadd.f32 %v1640_v26, %v1639_v25  ;;  %v1870_v25 = vmov 0   ;;  %v1784_v26 = vld [vmem:[%s2395_s3 + $0x8] sm:$0xff]  }
 0x52e   :  { %1182 = vmatprep.subr.bf16.mxu0 %v1870_v25 }
 0x549   :  { %v936_v28 = vpop.f32.mrb[4].mxu1 }
 0x54a   :  { %v937_v12 = vadd.f32 %v1638_v6, %v936_v28  ;;  %v1676_v15 = vpop.f32.mrb[5].mxu1  ;;  %v1783_v6 = vld [vmem:[%s2395_s3] sm:$0xff]   ;;  %v1786_v28 = vld [vmem:[%s2395_s3 + $0x18] sm:$0xff]  }
 0x54b   :  { %v939_v29 = vpop.f32.mrb[6].mxu1  ;;  %1183 = vmatpush1.bf16.msra.mxu0 %v1783_v6  ;;  %v1788_v15 = vld [vmem:[%s2395_s3 + $0x28] sm:$0xff]  }
 0x54c   :  { %v940_v30 = vadd.f32 %v1641_v27, %v939_v29  ;;  %v1677_v22 = vpop.f32.mrb[7].mxu1  ;;  %v959_v18 = vmul.f32 %v937_v12, %v937_v12  ;;  %1184 = vmatprep.subr.bf16.mxu0 %v1870_v25  ;;  %v1785_v27 = vld [vmem:[%s2395_s3 + $0x10] sm:$0xff]  }
 0x54d   :  { %v1789_v29 = vld [vmem:[%s2395_s3 + $0x30] sm:$0xff]   ;;  %v1791_v22 = vld [vmem:[%s2395_s3 + $0x40] sm:$0xff]  }
 0x54e   :  { %v943_v31 = vadd.f32 %v940_v30, %v937_v12  ;;  %v960_v32 = vmul.f32 %v940_v30, %v940_v30 }
 0x54f   :  { %1185 = vmatpush1.bf16.msra.mxu0 %v1784_v26 }
 0x550   :  { %v944_v33 = vrot.slane %v943_v31, 4  ;;  %v961_v34 = vadd.f32 %v960_v32, %v959_v18  ;;  %1186 = vmatprep.subr.bf16.mxu0 %v1870_v25  ;;  %v1792_v18 = vld [vmem:[%s2395_s3 + $0x48] sm:$0xff]  }
 0x552   :  { %v945_v35 = vadd.f32 %v944_v33, %v943_v31  ;;  %v962_v36 = vrot.slane %v961_v34, 4  ;;  %v1793_v31 = vld [vmem:[%s2395_s3 + $0x50] sm:$0xff]  }
 0x553   :  { %1187 = vmatpush1.bf16.msra.mxu0 %v1785_v27 }
 0x554   :  { %v946_v37 = vrot.slane %v945_v35, 2  ;;  %v963_v38 = vadd.f32 %v962_v36, %v961_v34  ;;  %1188 = vmatprep.subr.bf16.mxu0 %v1870_v25 }
 0x556   :  { %v947_v39 = vadd.f32 %v946_v37, %v945_v35  ;;  %v964_v40 = vrot.slane %v963_v38, 2 }
 0x557   :  { %1189 = vmatpush1.bf16.msra.mxu0 %v1786_v28 }
 0x558   :  { %v948_v41 = vrot.slane %v947_v39, 1  ;;  %v965_v42 = vadd.f32 %v964_v40, %v963_v38  ;;  %1190 = vmatprep.subr.bf16.mxu0 %v1870_v25 }
 0x55a   :  { %v949_v43 = vadd.f32 %v948_v41, %v947_v39  ;;  %v966_v45 = vrot.slane %v965_v42, 1 }
 0x55c   :  { %950 = vrot.lane.b32.xlu0 %v949_v43, %s1863_s23  ;;  %v967_v46 = vadd.f32 %v966_v45, %v965_v42 }
 0x55e   :  { %968 = vrot.lane.b32.xlu1 %v967_v46, %s1863_s23 }
 0x5ce   :  { %v951_v47 = vpop.permute.xlu0 %950 }
 0x5cf   :  { %v952_v48 = vadd.f32 %v951_v47, %v949_v43 }
 0x5d0   :  { %v969_v50 = vpop.permute.xlu1 %968 }
 0x5d1   :  { %v970_v53 = vadd.f32 %v969_v50, %v967_v46  ;;  %953 = vrot.lane.b32.xlu0 %v952_v48, %s1864_s24 }
 0x5d3   :  { %971 = vrot.lane.b32.xlu1 %v970_v53, %s1864_s24 }
 0x643   :  { %v954_v54 = vpop.permute.xlu0 %953 }
 0x644   :  { %v955_v55 = vadd.f32 %v954_v54, %v952_v48  ;;  %v1794_v54 = vld [vmem:[%s2395_s3 + $0x58] sm:$0xff]  }
 0x645   :  { %v972_v52 = vpop.permute.xlu1 %971 }
 0x646   :  { %v973_v49 = vadd.f32 %v972_v52, %v970_v53  ;;  %956 = vrot.lane.b32.xlu0 %v955_v55, %s1865_s25 }
 0x648   :  { %974 = vrot.lane.b32.xlu1 %v973_v49, %s1865_s25 }
 0x6b8   :  { %v957_v56 = vpop.permute.xlu0 %956 }
 0x6b9   :  { %v958_v57 = vadd.f32 %v957_v56, %v955_v55 }
 0x6ba   :  { %v975_v58 = vpop.permute.xlu1 %974 }
 0x6bb   :  { %v977_v59 = vmul.f32 0.0078125, %v958_v57  ;;  %v976_v60 = vadd.f32 %v975_v58, %v973_v49 }
 0x6bd   :  { %v979_v61 = vmul.f32 %v977_v59, %v977_v59  ;;  %v978_v62 = vmul.f32 0.0078125, %v976_v60 }
 0x6bf   :  { %v980_v3 = vsub.f32 %v978_v62, %v979_v61 }
 0x6c1   :  { %v983_v4 = vadd.f32 1e-05, %v980_v3 }
 0x6c3   :  { %1803 = vrsqrt.f32 %v983_v4 }
 0x6cd   :  { %v1804_v7 = vpop.eup %1803 }
 0x6ce   :  { %v985_v8 = vmul.f32 %v1804_v7, %v981_v5 }
 0x6d0   :  { %v986_v10 = vmul.f32 %v985_v8, %v977_v59  ;;  %v991_v11 = vrot.slane %v985_v8, %v2023_v51 }
 0x6d2   :  { %v987_v13 = vsub.f32 %v982_v9, %v986_v10  ;;  %v993_v14 = vmul.f32 %v991_v11, %v940_v30  ;;  %v992_v17 = vmul.f32 %v991_v11, %v937_v12  ;;  %v1787_v12 = vld [vmem:[%s2395_s3 + $0x20] sm:$0xff]   ;;  %v1790_v30 = vld [vmem:[%s2395_s3 + $0x38] sm:$0xff]  }
 0x6d3   :  { %1191 = vmatpush1.bf16.msra.mxu0 %v1787_v12 }
 0x6d4   :  { %v997_v16 = vrot.slane %v987_v13, %v2023_v51  ;;  %1192 = vmatprep.subr.bf16.mxu0 %v1870_v25 }
 0x6d6   :  { %v999_v19 = vadd.f32 %v997_v16, %v993_v14  ;;  %v998_v1 = vadd.f32 %v997_v16, %v992_v17 }
 0x6d7   :  { %1193 = vmatpush1.bf16.msra.mxu0 %v1788_v15 }
 0x6d8   :  { %v1001_v63 = vmax.f32 %v999_v19, 0.0  ;;  %v1000_v20 = vmax.f32 %v998_v1, 0.0  ;;  %1194 = vmatprep.subr.bf16.mxu0 %v1870_v25 }
 0x6da   :  { %1006 = vrot.lane.b32.xlu1 %v1001_v63, %s1867_s30  ;;  %1004 = vrot.lane.b32.xlu0 %v1000_v20, %s1867_s30 }
 0x6db   :  { %1195 = vmatpush1.bf16.msra.mxu0 %v1789_v29 }
 0x6dc   :  { %1196 = vmatprep.subr.bf16.mxu0 %v1870_v25 }
 0x6df   :  { %1197 = vmatpush1.bf16.msra.mxu0 %v1790_v30 }
 0x6e0   :  { %1198 = vmatprep.subr.bf16.mxu0 %v1870_v25 }
 0x6e3   :  { %1199 = vmatpush1.bf16.msra.mxu0 %v1791_v22 }
 0x6e4   :  { %1200 = vmatprep.subr.bf16.mxu0 %v1870_v25 }
 0x6e7   :  { %1201 = vmatpush1.bf16.msra.mxu0 %v1792_v18 }
 0x6e8   :  { %1202 = vmatprep.subr.bf16.mxu0 %v1870_v25 }
 0x6eb   :  { %1203 = vmatpush1.bf16.msra.mxu0 %v1793_v31 }
 0x6ec   :  { %1204 = vmatprep.subr.bf16.mxu0 %v1870_v25 }
 0x6ef   :  { %1205 = vmatpush1.bf16.msra.mxu0 %v1794_v54 }
 0x74c   :  { %v1007_v21 = vpop.permute.xlu1 %1006  ;;  %v1005_v23 = vpop.permute.xlu0 %1004 }
 0x74d   :  { %v1011_v24 = vmax.f32 %v1001_v63, %v1007_v21  ;;  %v1010_v2 = vmax.f32 %v1000_v20, %v1005_v23 }
 0x74f   :  { %1016 = vrot.lane.b32.xlu1 %v1011_v24, %s1867_s30  ;;  %1014 = vrot.lane.b32.xlu0 %v1010_v2, %s1867_s30 }
 0x753   :  { %1022 = vrot.lane.b32.xlu1 %v1011_v24, %s1862_s22  ;;  %1020 = vrot.lane.b32.xlu0 %v1010_v2, %s1862_s22 }
 0x757   :  { %1028 = vrot.lane.b32.xlu1 %v1011_v24, %s1868_s21  ;;  %1026 = vrot.lane.b32.xlu0 %v1010_v2, %s1868_s21 }
 0x7c1   :  { %v1017_v32 = vpop.permute.xlu1 %1016  ;;  %v1015_v33 = vpop.permute.xlu0 %1014 }
 0x7c2   :  { %v1033_v36 = vsel %vm221_vm2, %v1011_v24, %v1017_v32  ;;  %v1032_v37 = vsel %vm221_vm2, %v1010_v2, %v1015_v33 }
 0x7c5   :  { %v1023_v34 = vpop.permute.xlu1 %1022  ;;  %v1021_v35 = vpop.permute.xlu0 %1020 }
 0x7c6   :  { %v1035_v38 = vsel %vm614_vm8, %v1033_v36, %v1023_v34  ;;  %v1034_v39 = vsel %vm614_vm8, %v1032_v37, %v1021_v35 }
 0x7c9   :  { %v1029_v40 = vpop.permute.xlu1 %1028  ;;  %v1027_v41 = vpop.permute.xlu0 %1026 }
 0x7ca   :  { %v1037_v42 = vsel %vm51_vm1, %v1035_v38, %v1029_v40  ;;  %v1036_v43 = vsel %vm51_vm1, %v1034_v39, %v1027_v41 }
 0x7cb   :  { %1039 = vst.msk [vmem:[#allocation3 + $0x10] sm:$0xff] %vm623_vm9, %v1037_v42  ;;  %1038 = vst.msk [vmem:[#allocation3] sm:$0xff] %vm623_vm9, %v1036_v43  ;;  %v1277_v42 = vld [vmem:[%s2397_s5 + $0x2] sm:$0x1] }
 0x7d2   :  { %v1042_v45 = vld [vmem:[#allocation3 + $0x10] ss:$2 sm:$0xf]  ;;  %v1044_v46 = vld [vmem:[#allocation3 + $0x11] ss:$2 sm:$0xf] }
 0x7d3   :  { %v1046_v47 = vmax.f32 %v1042_v45, %v1044_v46  ;;  %v1040_v48 = vld [vmem:[#allocation3] ss:$2 sm:$0xf]  ;;  %v1043_v50 = vld [vmem:[#allocation3 + $0x1] ss:$2 sm:$0xf] }
 0x7d4   :  { %v1045_v53 = vmax.f32 %v1040_v48, %v1043_v50  ;;  %v1278_v46 = vld [vmem:[%s2398_s6 + $0x2] sm:$0x1] }
 0x7d5   :  { %1054 = vst.msk [vmem:[#allocation2 + $0x19] sm:$0xf] %vm1052_vm13, %v1046_v47 }
 0x7d6   :  { %1053 = vst.msk [vmem:[#allocation2 + $0x1] sm:$0xf] %vm1052_vm13, %v1045_v53 }
 0x7dc   :  { %v1058_v55 = vld [vmem:[#allocation2 + $0x19] sm:$0xf] }
 0x7dd   :  { %v1056_v52 = vld [vmem:[#allocation2 + $0x18] sm:$0xf]  ;;  %1065 = vrot.lane.b32.xlu1 %v1058_v55, %s1865_s25  ;;  %v1057_v49 = vld [vmem:[#allocation2 + $0x1] sm:$0xf] }
 0x7de   :  { %v1782_v56 = vld [vmem:[#allocation2 + $0x2] ss:$24 sps:$4 sm:$0xff]   ;;  %1319 = vst.msk [vmem:[#allocation2 + $0x18] sm:$0x1] %vm1317_vm14, %v1860_v0  ;;  %1063 = vrot.lane.b32.xlu0 %v1057_v49, %s1865_s25 }
 0x7df   :  { %1321 = vst.msk [vmem:[#allocation2 + $0x1b] sm:$0x1] %vm1317_vm14, %v1860_v0  ;;  %v1055_v57 = vld [vmem:[#allocation2] sm:$0xf]  ;;  %v1082_v58 = vpack.c.bf16 %v1782_v56, %v1782_v56 }
 0x7e0   :  { %1318 = vst.msk [vmem:[#allocation2] sm:$0x1] %vm1317_vm14, %v1860_v0  ;;  %1320 = vst.msk [vmem:[#allocation2 + $0x3] sm:$0x1] %vm1317_vm14, %v1860_v0 }
 0x7e1   :  { %1612 = vmatprep.mubr.msk.bf16.mxu0 %vm623_vm9, %v1082_v58  ;;  %v1796_v58 = vld [vmem:[%s2396_s4 + $0x8] sm:$0xff]  }
 0x84f   :  { %v1066_v59 = vpop.permute.xlu1 %1065 }
 0x850   :  { %v1070_v60 = vsel %vm623_vm9, %v1056_v52, %v1066_v59  ;;  %v1064_v61 = vpop.permute.xlu0 %1063  ;;  %v1797_v59 = vld [vmem:[%s2396_s4 + $0x10] sm:$0xff]  }
 0x851   :  { %v1069_v62 = vsel %vm623_vm9, %v1055_v57, %v1064_v61  ;;  %v1795_v57 = vld [vmem:[%s2396_s4] sm:$0xff]  }
 0x852   :  { %v1598_v3 = vcombine.low %v1069_v62, %v1070_v60  ;;  %1679 = vmatpush3.bf16.msra.mxu1 %v1795_v57 }
 0x853   :  { %1680 = vmatprep.subr.bf16.mxu1 %v1860_v0 }
 0x854   :  { %v1081_v4 = vpack.c.bf16 %v1598_v3, %v1598_v3  ;;  %v1798_v3 = vld [vmem:[%s2396_s4 + $0x18] sm:$0xff]  }
 0x856   :  { %1215 = vmatmul.mubr.bf16.vlgmr.msra.gmra.mrb[8].mxu0 %v1081_v4  ;;  %1681 = vmatpush3.bf16.msra.mxu1 %v1796_v58 }
 0x857   :  { %1682 = vmatprep.subr.bf16.mxu1 %v1860_v0 }
 0x85a   :  { %1683 = vmatpush3.bf16.msra.mxu1 %v1797_v59 }
 0x85b   :  { %1684 = vmatprep.subr.bf16.mxu1 %v1860_v0 }
 0x85e   :  { %1685 = vmatpush3.bf16.msra.mxu1 %v1798_v3 }
 0x85f   :  { %1686 = vmatprep.subr.bf16.mxu1 %v1860_v0 }
 0x929   :  { %v1216_v5 = vpop.f32.mrb[8].mxu0 }
 0x92a   :  { %v1222_v7 = vsel %vm623_vm9, %v1216_v5, 0.0  ;;  %v1247_v8 = vmul.f32 %v1216_v5, %v1216_v5  ;;  %v1218_v9 = vpop.f32.mrb[9].mxu0 }
 0x92b   :  { %v1223_v10 = vrot.slane %v1222_v7, 4  ;;  %v1219_v11 = vpop.f32.mrb[10].mxu0 }
 0x92c   :  { %v1248_v13 = vsel %vm623_vm9, %v1247_v8, 0.0  ;;  %v1220_v14 = vpop.f32.mrb[11].mxu0  ;;  %v1799_v11 = vld [vmem:[%s2396_s4 + $0x20] sm:$0xff]  }
 0x92d   :  { %v1224_v16 = vadd.f32 %v1223_v10, %v1222_v7  ;;  %v1249_v17 = vrot.slane %v1248_v13, 4  ;;  %1687 = vmatpush3.bf16.msra.mxu1 %v1799_v11 }
 0x92e   :  { %1688 = vmatprep.subr.bf16.mxu1 %v1860_v0 }
 0x92f   :  { %v1225_v19 = vrot.slane %v1224_v16, 2  ;;  %v1250_v1 = vadd.f32 %v1249_v17, %v1248_v13  ;;  %v1800_v13 = vld [vmem:[%s2396_s4 + $0x28] sm:$0xff]  }
 0x931   :  { %v1226_v63 = vadd.f32 %v1225_v19, %v1224_v16  ;;  %v1251_v20 = vrot.slane %v1250_v1, 2  ;;  %1689 = vmatpush3.bf16.msra.mxu1 %v1800_v13 }
 0x933   :  { %v1227_v21 = vrot.slane %v1226_v63, 1  ;;  %v1252_v23 = vadd.f32 %v1251_v20, %v1250_v1  ;;  %v1871_v1 = vmov 1983009808  }
 0x935   :  { %v1228_v24 = vadd.f32 %v1227_v21, %v1226_v63  ;;  %v1253_v2 = vrot.slane %v1252_v23, 1  ;;  %v1355_v63 = vunpack.c.l.s4 %v1871_v1 }
 0x937   :  { %1233 = vrot.lane.b32.xlu1 %v1228_v24, %s1861_s0  ;;  %1230 = vrot.lane.b32.xlu0 %v1228_v24, %s1867_s30  ;;  %v1254_v6 = vadd.f32 %v1253_v2, %v1252_v23  ;;  %v1356_v21 = vunpack.c.0.s8 %v1355_v63 }
 0x93b   :  { %1259 = vrot.lane.b32.xlu1 %v1254_v6, %s1861_s0  ;;  %1256 = vrot.lane.b32.xlu0 %v1254_v6, %s1867_s30 }
 0x9a9   :  { %v1234_v25 = vpop.permute.xlu1 %1233  ;;  %v1231_v26 = vpop.permute.xlu0 %1230 }
 0x9aa   :  { %v1236_v27 = vsel %vm51_vm1, %v1231_v26, %v1234_v25  ;;  %v1359_v26 = vsub.s32 %v1356_v21, %v2016_v44 }
 0x9ab   :  { %v1237_v28 = vadd.f32 %v1236_v27, %v1228_v24 }
 0x9ad   :  { %v1260_v12 = vpop.permute.xlu1 %1259  ;;  %1242 = vrot.lane.b32.xlu1 %v1237_v28, %s1864_s24  ;;  %1239 = vrot.lane.b32.xlu0 %v1237_v28, %s1862_s22  ;;  %v1257_v15 = vpop.permute.xlu0 %1256 }
 0x9ae   :  { %v1262_v29 = vsel %vm51_vm1, %v1257_v15, %v1260_v12  ;;  %vm1525_vm1 = vcmask 123904  }
 0x9af   :  { %v1263_v30 = vadd.f32 %v1262_v29, %v1254_v6 }
 0x9b1   :  { %1268 = vrot.lane.b32.xlu1 %v1263_v30, %s1864_s24  ;;  %1265 = vrot.lane.b32.xlu0 %v1263_v30, %s1862_s22 }
 0xa1f   :  { %v1243_v22 = vpop.permute.xlu1 %1242  ;;  %v1240_v18 = vpop.permute.xlu0 %1239 }
 0xa20   :  { %v1245_v31 = vsel %vm614_vm8, %v1240_v18, %v1243_v22 }
 0xa21   :  { %v1246_v32 = vadd.f32 %v1245_v31, %v1237_v28 }
 0xa23   :  { %v1273_v33 = vmul.f32 0.03125, %v1246_v32  ;;  %v1269_v34 = vpop.permute.xlu1 %1268  ;;  %v1266_v35 = vpop.permute.xlu0 %1265 }
 0xa24   :  { %v1271_v36 = vsel %vm614_vm8, %v1266_v35, %v1269_v34 }
 0xa25   :  { %v1272_v37 = vadd.f32 %v1271_v36, %v1263_v30  ;;  %v1275_v38 = vmul.f32 %v1273_v33, %v1273_v33 }
 0xa27   :  { %v1274_v39 = vmul.f32 0.03125, %v1272_v37 }
 0xa29   :  { %v1276_v40 = vsub.f32 %v1274_v39, %v1275_v38 }
 0xa2b   :  { %v1279_v41 = vadd.f32 1e-05, %v1276_v40 }
 0xa2d   :  { %1805 = vrsqrt.f32 %v1279_v41 }
 0xa37   :  { %v1806_v43 = vpop.eup %1805 }
 0xa38   :  { %v1281_v45 = vmul.f32 %v1806_v43, %v1277_v42 }
 0xa3a   :  { %v1282_v47 = vmul.f32 %v1281_v45, %v1273_v33  ;;  %v1287_v48 = vrot.slane %v1281_v45, %v2023_v51 }
 0xa3c   :  { %v1283_v50 = vsub.f32 %v1278_v46, %v1282_v47  ;;  %v1288_v53 = vmul.f32 %v1287_v48, %v1216_v5 }
 0xa3e   :  { %v1292_v54 = vrot.slane %v1283_v50, %v2023_v51 }
 0xa40   :  { %v1293_v55 = vadd.f32 %v1292_v54, %v1288_v53 }
 0xa42   :  { %v1294_v52 = vmax.f32 %v1293_v55, 0.0 }
 0xa44   :  { %1296 = vrot.lane.b32.xlu0 %v1294_v52, %s1867_s30 }
 0xab6   :  { %v1297_v49 = vpop.permute.xlu0 %1296 }
 0xab7   :  { %v1299_v56 = vmax.f32 %v1294_v52, %v1297_v49 }
 0xab9   :  { %1301 = vrot.lane.b32.xlu1 %v1299_v56, %s1867_s30 }
 0xb2b   :  { %v1302_v60 = vpop.permute.xlu1 %1301 }
 0xb2c   :  { %v1304_v61 = vsel %vm221_vm2, %v1299_v56, %v1302_v60 }
 0xb2d   :  { %v1306_v62 = vcombine.high %v1304_v61, %v1304_v61  ;;  %1309 = vst.msk [vmem:[#allocation3] sm:$0xf] %vm1308_vm15, %v1304_v61 }
 0xb2f   :  { %1310 = vst.msk [vmem:[#allocation3 + $0x10] sm:$0xf] %vm1308_vm15, %v1306_v62  ;;  %v1491_v62 = vld [vmem:[%s2397_s5 + $0x3] sm:$0x1]  ;;  %s1872_s5 = smov [#allocation7]  }
 0xb34   :  { %v1311_v4 = vld [vmem:[#allocation3] ss:$2 sm:$0x3]  ;;  %v1313_v5 = vld [vmem:[#allocation3 + $0x1] ss:$2 sm:$0x3] }
 0xb35   :  { %v1315_v7 = vmax.f32 %v1311_v4, %v1313_v5  ;;  %v1492_v5 = vld [vmem:[%s2398_s6 + $0x3] sm:$0x1]  ;;  %s1542_s6 = sshll.u32 %s1872_s5, 4  ;;  %s1543_s6 = int_to_ptr.vmem [resolvable:$true] %s1542_s6 }
 0xb36   :  { %v1312_v8 = vld [vmem:[#allocation3 + $0x10] ss:$2 sm:$0x3]  ;;  %v1314_v9 = vld [vmem:[#allocation3 + $0x11] ss:$2 sm:$0x3]  ;;  %p1836_p9 = scmp.lt.s32.totalorder %s1543_s6, %s1543_s6 }
 0xb37   :  { %v1316_v10 = vmax.f32 %v1312_v8, %v1314_v9  ;;  %1323 = vst.msk [vmem:[#allocation2 + $0x1] sm:$0x3] %vm1322_vm0, %v1315_v7 }
 0xb39   :  { %1324 = vst.msk [vmem:[#allocation2 + $0x19] sm:$0x3] %vm1322_vm0, %v1316_v10 }
 0xb3e   :  { %v1327_v14 = vld [vmem:[#allocation2 + $0x1] sm:$0x3] }
 0xb3f   :  { %1333 = vrot.lane.b32.xlu0 %v1327_v14, %s1864_s24  ;;  %v1329_v17 = vld [vmem:[#allocation2 + $0x2] sm:$0x3]  ;;  %v1325_v24 = vld [vmem:[#allocation2] sm:$0x3] }
 0xb40   :  { %v1328_v16 = vld [vmem:[#allocation2 + $0x19] sm:$0x3] }
 0xb41   :  { %1335 = vrot.lane.b32.xlu1 %v1328_v16, %s1864_s24  ;;  %v1330_v19 = vld [vmem:[#allocation2 + $0x1a] sm:$0x3]  ;;  %v1326_v2 = vld [vmem:[#allocation2 + $0x18] sm:$0x3] }
 0xb43   :  { %1341 = vrot.lane.b32.xlu0 %v1329_v17, %s1865_s25 }
 0xb45   :  { %1343 = vrot.lane.b32.xlu1 %v1330_v19, %s1865_s25 }
 0xbb1   :  { %v1334_v0 = vpop.permute.xlu0 %1333 }
 0xbb2   :  { %v1347_v6 = vsel %vm614_vm8, %v1325_v24, %v1334_v0 }
 0xbb3   :  { %v1336_v20 = vpop.permute.xlu1 %1335 }
 0xbb4   :  { %v1348_v25 = vsel %vm614_vm8, %v1326_v2, %v1336_v20 }
 0xbb5   :  { %v1342_v23 = vpop.permute.xlu0 %1341 }
 0xbb6   :  { %v1349_v28 = vsel %vm623_vm9, %v1347_v6, %v1342_v23 }
 0xbb7   :  { %v1344_v27 = vpop.permute.xlu1 %1343 }
 0xbb8   :  { %v1350_v12 = vsel %vm623_vm9, %v1348_v25, %v1344_v27 }
 0xbb9   :  { %v1353_v15 = vcombine.low %v1349_v28, %v1350_v12 }
 0xbbb   :  { %v1360_v29 = vrot.slane %v1353_v15, %v1359_v26 }
 0xbbd   :  { %v1362_v30 = vpack.c.bf16 %v1360_v29, %v1360_v29 }
 0xbbf   :  { %1691 = vmatmul.mubr.msk.bf16.vlgmr.msra.gmra.mrb[8].mxu1 %vm104_vm3, %v1362_v30 }
 0xc92   :  { %v1448_v22 = vpop.f32.mrb[8].mxu1 }
 0xc93   :  { %v1454_v18 = vsel %vm1308_vm15, %v1448_v22, 0.0  ;;  %v1470_v31 = vmul.f32 %v1448_v22, %v1448_v22  ;;  %v1692_v32 = vpop.f32.mrb[9].mxu1 }
 0xc94   :  { %v1455_v33 = vrot.slane %v1454_v18, 4  ;;  %v1451_v34 = vpop.f32.mrb[10].mxu1 }
 0xc95   :  { %v1471_v35 = vsel %vm1308_vm15, %v1470_v31, 0.0  ;;  %v1693_v44 = vpop.f32.mrb[11].mxu1 }
 0xc96   :  { %v1456_v36 = vadd.f32 %v1455_v33, %v1454_v18  ;;  %v1472_v37 = vrot.slane %v1471_v35, 4 }
 0xc98   :  { %v1457_v38 = vrot.slane %v1456_v36, 2  ;;  %v1473_v39 = vadd.f32 %v1472_v37, %v1471_v35 }
 0xc9a   :  { %v1458_v40 = vadd.f32 %v1457_v38, %v1456_v36  ;;  %v1474_v41 = vrot.slane %v1473_v39, 2 }
 0xc9c   :  { %v1459_v42 = vrot.slane %v1458_v40, 1  ;;  %v1475_v43 = vadd.f32 %v1474_v41, %v1473_v39 }
 0xc9e   :  { %v1460_v45 = vadd.f32 %v1459_v42, %v1458_v40  ;;  %v1476_v46 = vrot.slane %v1475_v43, 1 }
 0xca0   :  { %1465 = vrot.lane.b32.xlu1 %v1460_v45, %s1863_s23  ;;  %1462 = vrot.lane.b32.xlu0 %v1460_v45, %s1867_s30  ;;  %v1477_v47 = vadd.f32 %v1476_v46, %v1475_v43 }
 0xca4   :  { %1482 = vrot.lane.b32.xlu1 %v1477_v47, %s1863_s23  ;;  %1479 = vrot.lane.b32.xlu0 %v1477_v47, %s1867_s30 }
 0xd12   :  { %v1466_v48 = vpop.permute.xlu1 %1465  ;;  %v1463_v50 = vpop.permute.xlu0 %1462 }
 0xd13   :  { %v1468_v53 = vsel %vm221_vm2, %v1463_v50, %v1466_v48 }
 0xd14   :  { %v1469_v54 = vadd.f32 %v1468_v53, %v1460_v45 }
 0xd16   :  { %v1487_v55 = vmul.f32 0.125, %v1469_v54  ;;  %v1483_v52 = vpop.permute.xlu1 %1482  ;;  %v1480_v49 = vpop.permute.xlu0 %1479 }
 0xd17   :  { %v1485_v56 = vsel %vm221_vm2, %v1480_v49, %v1483_v52  ;;  %vm1534_vm2 = vcmask 122880  }
 0xd18   :  { %v1486_v57 = vadd.f32 %v1485_v56, %v1477_v47  ;;  %v1489_v58 = vmul.f32 %v1487_v55, %v1487_v55 }
 0xd1a   :  { %v1488_v59 = vmul.f32 0.125, %v1486_v57 }
 0xd1c   :  { %v1490_v60 = vsub.f32 %v1488_v59, %v1489_v58 }
 0xd1e   :  { %v1493_v61 = vadd.f32 1e-05, %v1490_v60 }
 0xd20   :  { %1807 = vrsqrt.f32 %v1493_v61 }
 0xd2a   :  { %v1808_v3 = vpop.eup %1807 }
 0xd2b   :  { %v1495_v4 = vmul.f32 %v1808_v3, %v1491_v62 }
 0xd2d   :  { %v1496_v7 = vmul.f32 %v1495_v4, %v1487_v55  ;;  %v1501_v8 = vrot.slane %v1495_v4, %v2023_v51 }
 0xd2f   :  { %v1497_v9 = vsub.f32 %v1492_v5, %v1496_v7  ;;  %v1502_v10 = vmul.f32 %v1501_v8, %v1448_v22 }
 0xd31   :  { %v1506_v11 = vrot.slane %v1497_v9, %v2023_v51 }
 0xd33   :  { %v1507_v13 = vadd.f32 %v1506_v11, %v1502_v10 }
 0xd35   :  { %v1508_v14 = vmax.f32 %v1507_v13, 0.0 }
 0xd37   :  { %1510 = vrot.lane.b32.xlu0 %v1508_v14, %s1867_s30  ;;  %s1831_s30 = scalar_lea.vmem %s1543_s6, 32 }
 0xd38   :  { %p1832_p8 = scmp.ne.s32.totalorder %s1543_s6, %s1831_s30  ;;  %p1837_p10 = scmp.lt.s32.totalorder %s1831_s30, %s1831_s30 }
 0xd3a   :  { %p1838_p11 = por %p1837_p10, %p1836_p9 }
 0xd3c   :  { %p1839_p12 = pnand %p1838_p11, %p1832_p8 }
 0xda9   :  { %v1511_v16 = vpop.permute.xlu0 %1510 }
 0xdaa   :  { %v1513_v17 = vmax.f32 %v1508_v14, %v1511_v16 }
 0xdac   :  { %v1521_v19 = vrot.slane %v1513_v17, %v1359_v26 }
 0xdae   :  { %v1522_v1 = vcombine.high %v1521_v19, %v1521_v19  ;;  %1526 = vst.msk [vmem:[#allocation3] sm:$0x3] %vm1525_vm1, %v1521_v19 }
 0xdb0   :  { %1527 = vst.msk [vmem:[#allocation3 + $0x10] sm:$0x3] %vm1525_vm1, %v1522_v1 }
 0xdb5   :  { %v1528_v63 = vld [vmem:[#allocation3] ss:$2 sm:$0x1]  ;;  %v1530_v0 = vld [vmem:[#allocation3 + $0x1] ss:$2 sm:$0x1] }
 0xdb6   :  { %v1532_v20 = vmax.f32 %v1528_v63, %v1530_v0 }
 0xdb7   :  { %v1529_v21 = vld [vmem:[#allocation3 + $0x10] ss:$2 sm:$0x1]  ;;  %v1531_v23 = vld [vmem:[#allocation3 + $0x11] ss:$2 sm:$0x1] }
 0xdb8   :  { %v1533_v51 = vmax.f32 %v1529_v21, %v1531_v23  ;;  %1535 = vst.msk [vmem:[#allocation7] sm:$0x1] %vm1534_vm2, %v1532_v20 }
 0xdba   :  { %1536 = vst.msk [vmem:[#allocation7 + $0x1] sm:$0x1] %vm1534_vm2, %v1533_v51 }
 0xdbb   :  { %1842 = shalt.err (!%p1839_p12)
}
 0xdbc   :  { %s1843_s27 = scalar_lea.hbm %s2399_s7, 32 }
 0xdbd   :  { %p1844_p13 = scmp.ne.s32.totalorder %s2399_s7, %s1843_s27  ;;  %p1847_p0 = scmp.lt.u32.totalorder %s1843_s27, %s2399_s7 }
 0xdbf   :  { %p1849_p1 = pnand %p1847_p0, %p1844_p13 }
 0xdc1   :  { %1852 = shalt.err (!%p1849_p1)
}
 0xdc2   :  { %s1873_s0 = smov 1  }
 0xdc3   :  { %1548 = dma.vmem_to_hbm [thread:$0]  %s1543_s6, 32, %s2399_s7, [#allocation6], %s1863_s23, %s1863_s23, %s1873_s0  }
 0xdc4   :  { %1855 = dma.done.wait [#allocation6], 32  }
 0xdc5   :  { %1856 = vsyncadd [#allocation6], 4294967264 }
 0xdc6   :  { %1552 = vsyncpa [#allocation5], 1 }
 0xdc7   :  { %1553 = vsyncpa [#allocation6], 1 }

</bundles_post_ra>
